<compile_context>
chip_gen: v6e
topology: v6e:2x2x1
jax: 0.10.0
libtpu: 0.0.40
codegen_flags: <defaults>
</compile_context>

<pallas_src>
import jax
import jax.numpy as jnp
from jax.experimental import pallas as pl
from jax.experimental.pallas import tpu as pltpu


_SQRT_2_OVER_PI = 0.7978845608028654


def _gelu_tanh(v):
    # TODO(synk): nn.GELU() defaults to the exact erf form; the tanh
    # approximation is used for guaranteed Mosaic lowering (|diff| < 1e-3).
    return 0.5 * v * (1.0 + jnp.tanh(_SQRT_2_OVER_PI * (v + 0.044715 * v * v * v)))


def _gmlp_block_kernel(x_ref, w_in_ref, b_in_ref, gamma_ref, beta_ref,
                       w_sp_ref, b_sp_ref, w_out_ref, b_out_ref, o_ref):
    """Whole gMLP block for one batch element (full sequence in VMEM)."""
    x = x_ref[0]                                              # [S, D]

    # proj_in + GELU
    h = jnp.dot(x, w_in_ref[...], preferred_element_type=jnp.float32)
    h = h + b_in_ref[...]
    h = _gelu_tanh(h)                                         # [S, Dff]

    # SGU: split, LayerNorm(gate) over the channel (lane) axis, eps=1e-5.
    f2 = gamma_ref.shape[-1]
    res = h[:, :f2]                                           # [S, F2]
    gate = h[:, f2:]                                          # [S, F2]
    mean = jnp.mean(gate, axis=-1, keepdims=True)
    var = jnp.mean(jnp.square(gate - mean), axis=-1, keepdims=True)
    gate = (gate - mean) * jax.lax.rsqrt(var + 1e-5)
    gate = gate * gamma_ref[...] + beta_ref[...]

    # Spatial projection: Conv1d(seq, seq, 1) == matmul over the sequence axis.
    g = jnp.dot(w_sp_ref[...], gate, preferred_element_type=jnp.float32)
    g = g + b_sp_ref[...]                                     # [S,1] broadcast
    gated = g * res                                           # SGU act = Identity

    # proj_out
    out = jnp.dot(gated, w_out_ref[...], preferred_element_type=jnp.float32)
    out = out + b_out_ref[...]
    o_ref[0] = out.astype(o_ref.dtype)


def gmlp_block(x, w_in, b_in, gamma, beta, w_sp, b_sp, w_out, b_out):
    """x: [B,S,dim]; w_in: [dim,dim_ff]; w_sp: [S,S]; w_out: [dim_ff//2,dim]."""
    B, S, D = x.shape
    Din, Dff = w_in.shape
    assert Din == D
    F2 = Dff // 2
    Dout = w_out.shape[1]

    b_in2 = b_in.reshape(1, Dff)
    gamma2 = gamma.reshape(1, F2)
    beta2 = beta.reshape(1, F2)
    b_sp2 = b_sp.reshape(S, 1)
    b_out2 = b_out.reshape(1, Dout)

    cost = pl.CostEstimate(
        flops=B * (2 * S * D * Dff + 2 * S * S * F2 + 2 * S * F2 * Dout),
        transcendentals=B * S * Dff,
        bytes_accessed=4 * (B * S * D + D * Dff + Dff + 2 * F2
                            + S * S + S + F2 * Dout + Dout + B * S * Dout),
    )

    out = pl.pallas_call(
        _gmlp_block_kernel,
        out_shape=jax.ShapeDtypeStruct((B, S, Dout), x.dtype),
        grid_spec=pltpu.PrefetchScalarGridSpec(
            num_scalar_prefetch=0,
            grid=(B,),
            in_specs=[
                pl.BlockSpec((1, S, D), lambda b: (b, 0, 0)),    # x (pipelined)
                pl.BlockSpec((D, Dff), lambda b: (0, 0)),        # W_in  (resident)
                pl.BlockSpec((1, Dff), lambda b: (0, 0)),        # b_in
                pl.BlockSpec((1, F2), lambda b: (0, 0)),         # LN gamma
                pl.BlockSpec((1, F2), lambda b: (0, 0)),         # LN beta
                pl.BlockSpec((S, S), lambda b: (0, 0)),          # W_sp  (resident)
                pl.BlockSpec((S, 1), lambda b: (0, 0)),          # b_sp
                pl.BlockSpec((F2, Dout), lambda b: (0, 0)),      # W_out (resident)
                pl.BlockSpec((1, Dout), lambda b: (0, 0)),       # b_out
            ],
            out_specs=pl.BlockSpec((1, S, Dout), lambda b: (b, 0, 0)),
        ),
        compiler_params=pltpu.CompilerParams(
            dimension_semantics=("parallel",)),
        cost_estimate=cost,
    )(x, w_in, b_in2, gamma2, beta2, w_sp, b_sp2, w_out, b_out2)
    return out


if __name__ == "__main__":
    key = jax.random.PRNGKey(0)
    ks = jax.random.split(key, 6)

    # Small but lane-dense shapes: dim, dim_ff, dim_ff//2 all multiples of 128.
    B, S, dim, dim_ff = 2, 128, 128, 256
    F2 = dim_ff // 2

    x = jax.random.normal(ks[0], (B, S, dim), dtype=jnp.float32)
    # proj_in: Linear(dim, dim_ff) stored as [in, out]
    w_in = jax.random.normal(ks[1], (dim, dim_ff), dtype=jnp.float32) / jnp.sqrt(dim)
    b_in = jax.random.normal(ks[2], (dim_ff,), dtype=jnp.float32) * 0.01
    # SGU LayerNorm params (default init)
    gamma = jnp.ones((F2,), jnp.float32)
    beta = jnp.zeros((F2,), jnp.float32)
    # SGU spatial proj: Conv1d(S, S, 1) with uniform(-eps, eps) weight, bias = 1
    init_eps = 0.001 / S
    w_sp = jax.random.uniform(ks[3], (S, S), jnp.float32, -init_eps, init_eps)
    b_sp = jnp.ones((S,), jnp.float32)
    # proj_out: Linear(dim_ff//2, dim) stored as [in, out]
    w_out = jax.random.normal(ks[4], (F2, dim), jnp.float32) / jnp.sqrt(F2)
    b_out = jax.random.normal(ks[5], (dim,), jnp.float32) * 0.01

    out = gmlp_block(x, w_in, b_in, gamma, beta, w_sp, b_sp, w_out, b_out)
    out = jax.block_until_ready(out)

    # Pure-JAX reference of the same forward pass.
    hp = jnp.einsum("bsd,df->bsf", x, w_in,
                    precision=jax.lax.Precision.HIGHEST) + b_in
    hp = _gelu_tanh(hp)
    res_r, gate_r = hp[..., :F2], hp[..., F2:]
    mu = gate_r.mean(-1, keepdims=True)
    var = ((gate_r - mu) ** 2).mean(-1, keepdims=True)
    gate_n = (gate_r - mu) / jnp.sqrt(var + 1e-5) * gamma + beta
    g_ref = jnp.einsum("ij,bjf->bif", w_sp, gate_n,
                       precision=jax.lax.Precision.HIGHEST) + b_sp[None, :, None]
    ref = jnp.einsum("bsf,fd->bsd", g_ref * res_r, w_out,
                     precision=jax.lax.Precision.HIGHEST) + b_out

    assert out.shape == (B, S, dim) and out.dtype == x.dtype
    max_err = float(jnp.max(jnp.abs(out - ref)))
    assert jnp.allclose(out, ref, atol=1e-3, rtol=1e-3), max_err

    print("KERNEL_OK")
</pallas_src>

<mosaic_0001>
module attributes {stable_mosaic.version = 11 : i64} {
  func.func @_gmlp_block_kernel(%arg0: i32, %arg1: memref<1x128x128xf32, #tpu.memory_space<vmem>>, %arg2: memref<128x256xf32, #tpu.memory_space<vmem>>, %arg3: memref<1x256xf32, #tpu.memory_space<vmem>>, %arg4: memref<1x128xf32, #tpu.memory_space<vmem>>, %arg5: memref<1x128xf32, #tpu.memory_space<vmem>>, %arg6: memref<128x128xf32, #tpu.memory_space<vmem>>, %arg7: memref<128x1xf32, #tpu.memory_space<vmem>>, %arg8: memref<128x128xf32, #tpu.memory_space<vmem>>, %arg9: memref<1x128xf32, #tpu.memory_space<vmem>>, %arg10: memref<1x128x128xf32, #tpu.memory_space<vmem>>) attributes {dimension_semantics = [#tpu.dimension_semantics<parallel>], iteration_bounds = array<i64: 2>, scalar_prefetch = 0 : i64, scratch_operands = 0 : i64, tpu.core_type = #tpu.core_type<tc>, window_params = [{transform_indices = @transform_0, window_bounds = array<i64: 1, 128, 128>}, {pipeline_mode = #tpu.pipeline_mode<synchronous>, transform_indices = @transform_1, window_bounds = array<i64: 128, 256>}, {pipeline_mode = #tpu.pipeline_mode<synchronous>, transform_indices = @transform_2, window_bounds = array<i64: 1, 256>}, {pipeline_mode = #tpu.pipeline_mode<synchronous>, transform_indices = @transform_3, window_bounds = array<i64: 1, 128>}, {pipeline_mode = #tpu.pipeline_mode<synchronous>, transform_indices = @transform_4, window_bounds = array<i64: 1, 128>}, {pipeline_mode = #tpu.pipeline_mode<synchronous>, transform_indices = @transform_5, window_bounds = array<i64: 128, 128>}, {pipeline_mode = #tpu.pipeline_mode<synchronous>, transform_indices = @transform_6, window_bounds = array<i64: 128, 1>}, {pipeline_mode = #tpu.pipeline_mode<synchronous>, transform_indices = @transform_7, window_bounds = array<i64: 128, 128>}, {pipeline_mode = #tpu.pipeline_mode<synchronous>, transform_indices = @transform_8, window_bounds = array<i64: 1, 128>}, {transform_indices = @transform_9, window_bounds = array<i64: 1, 128, 128>}]} {
    %c0 = arith.constant 0 : index
    %c0_0 = arith.constant 0 : index
    %c0_1 = arith.constant 0 : index
    %0 = vector.load %arg1[%c0, %c0_0, %c0_1] : memref<1x128x128xf32, #tpu.memory_space<vmem>>, vector<1x128x128xf32>
    %1 = vector.shape_cast %0 : vector<1x128x128xf32> to vector<128x128xf32>
    %c0_2 = arith.constant 0 : index
    %c0_3 = arith.constant 0 : index
    %2 = vector.load %arg2[%c0_2, %c0_3] : memref<128x256xf32, #tpu.memory_space<vmem>>, vector<128x256xf32>
    %cst = arith.constant dense<0.000000e+00> : vector<128x256xf32>
    %3 = tpu.matmul %1, %2, %cst {dimension_numbers = #tpu.dot_dimension_numbers<[1], [0], [0], [1], [0, 0, 1, 1], [], []>} : vector<128x128xf32>, vector<128x256xf32>, vector<128x256xf32> -> vector<128x256xf32>
    %c0_4 = arith.constant 0 : index
    %c0_5 = arith.constant 0 : index
    %4 = vector.load %arg3[%c0_4, %c0_5] : memref<1x256xf32, #tpu.memory_space<vmem>>, vector<1x256xf32>
    %5 = vector.broadcast %4 : vector<1x256xf32> to vector<128x256xf32>
    %6 = arith.addf %3, %5 : vector<128x256xf32>
    %cst_6 = arith.constant 5.000000e-01 : f32
    %7 = vector.broadcast %cst_6 : f32 to vector<128x256xf32>
    %8 = arith.mulf %7, %6 : vector<128x256xf32>
    %cst_7 = arith.constant 4.471500e-02 : f32
    %9 = vector.broadcast %cst_7 : f32 to vector<128x256xf32>
    %10 = arith.mulf %9, %6 : vector<128x256xf32>
    %11 = arith.mulf %10, %6 : vector<128x256xf32>
    %12 = arith.mulf %11, %6 : vector<128x256xf32>
    %13 = arith.addf %6, %12 : vector<128x256xf32>
    %cst_8 = arith.constant 0.797884583 : f32
    %14 = vector.broadcast %cst_8 : f32 to vector<128x256xf32>
    %15 = arith.mulf %14, %13 : vector<128x256xf32>
    %16 = math.tanh %15 : vector<128x256xf32>
    %cst_9 = arith.constant 1.000000e+00 : f32
    %17 = vector.broadcast %cst_9 : f32 to vector<128x256xf32>
    %18 = arith.addf %17, %16 : vector<128x256xf32>
    %19 = arith.mulf %8, %18 : vector<128x256xf32>
    %20 = vector.extract_strided_slice %19 {offsets = [0, 0], sizes = [128, 128], strides = [1, 1]} : vector<128x256xf32> to vector<128x128xf32>
    %21 = vector.extract_strided_slice %19 {offsets = [0, 128], sizes = [128, 128], strides = [1, 1]} : vector<128x256xf32> to vector<128x128xf32>
    %cst_10 = arith.constant dense<0.000000e+00> : vector<128xf32>
    %22 = vector.multi_reduction <add>, %21, %cst_10 [1] : vector<128x128xf32> to vector<128xf32>
    %23 = vector.shape_cast %22 : vector<128xf32> to vector<128x1xf32>
    %cst_11 = arith.constant 1.280000e+02 : f32
    %24 = vector.broadcast %cst_11 : f32 to vector<128x1xf32>
    %25 = arith.divf %23, %24 : vector<128x1xf32>
    %26 = vector.broadcast %25 : vector<128x1xf32> to vector<128x128xf32>
    %27 = arith.subf %21, %26 : vector<128x128xf32>
    %28 = arith.mulf %27, %27 : vector<128x128xf32>
    %cst_12 = arith.constant dense<0.000000e+00> : vector<128xf32>
    %29 = vector.multi_reduction <add>, %28, %cst_12 [1] : vector<128x128xf32> to vector<128xf32>
    %30 = vector.shape_cast %29 : vector<128xf32> to vector<128x1xf32>
    %cst_13 = arith.constant 1.280000e+02 : f32
    %31 = vector.broadcast %cst_13 : f32 to vector<128x1xf32>
    %32 = arith.divf %30, %31 : vector<128x1xf32>
    %33 = vector.broadcast %25 : vector<128x1xf32> to vector<128x128xf32>
    %34 = arith.subf %21, %33 : vector<128x128xf32>
    %cst_14 = arith.constant 9.99999974E-6 : f32
    %35 = vector.broadcast %cst_14 : f32 to vector<128x1xf32>
    %36 = arith.addf %32, %35 : vector<128x1xf32>
    %37 = math.rsqrt %36 : vector<128x1xf32>
    %38 = vector.broadcast %37 : vector<128x1xf32> to vector<128x128xf32>
    %39 = arith.mulf %34, %38 : vector<128x128xf32>
    %c0_15 = arith.constant 0 : index
    %c0_16 = arith.constant 0 : index
    %40 = vector.load %arg4[%c0_15, %c0_16] : memref<1x128xf32, #tpu.memory_space<vmem>>, vector<1x128xf32>
    %41 = vector.broadcast %40 : vector<1x128xf32> to vector<128x128xf32>
    %42 = arith.mulf %39, %41 : vector<128x128xf32>
    %c0_17 = arith.constant 0 : index
    %c0_18 = arith.constant 0 : index
    %43 = vector.load %arg5[%c0_17, %c0_18] : memref<1x128xf32, #tpu.memory_space<vmem>>, vector<1x128xf32>
    %44 = vector.broadcast %43 : vector<1x128xf32> to vector<128x128xf32>
    %45 = arith.addf %42, %44 : vector<128x128xf32>
    %c0_19 = arith.constant 0 : index
    %c0_20 = arith.constant 0 : index
    %46 = vector.load %arg6[%c0_19, %c0_20] : memref<128x128xf32, #tpu.memory_space<vmem>>, vector<128x128xf32>
    %cst_21 = arith.constant dense<0.000000e+00> : vector<128x128xf32>
    %47 = tpu.matmul %46, %45, %cst_21 {dimension_numbers = #tpu.dot_dimension_numbers<[1], [0], [0], [1], [0, 0, 1, 1], [], []>} : vector<128x128xf32>, vector<128x128xf32>, vector<128x128xf32> -> vector<128x128xf32>
    %c0_22 = arith.constant 0 : index
    %c0_23 = arith.constant 0 : index
    %48 = vector.load %arg7[%c0_22, %c0_23] : memref<128x1xf32, #tpu.memory_space<vmem>>, vector<128x1xf32>
    %49 = vector.broadcast %48 : vector<128x1xf32> to vector<128x128xf32>
    %50 = arith.addf %47, %49 : vector<128x128xf32>
    %51 = arith.mulf %50, %20 : vector<128x128xf32>
    %c0_24 = arith.constant 0 : index
    %c0_25 = arith.constant 0 : index
    %52 = vector.load %arg8[%c0_24, %c0_25] : memref<128x128xf32, #tpu.memory_space<vmem>>, vector<128x128xf32>
    %cst_26 = arith.constant dense<0.000000e+00> : vector<128x128xf32>
    %53 = tpu.matmul %51, %52, %cst_26 {dimension_numbers = #tpu.dot_dimension_numbers<[1], [0], [0], [1], [0, 0, 1, 1], [], []>} : vector<128x128xf32>, vector<128x128xf32>, vector<128x128xf32> -> vector<128x128xf32>
    %c0_27 = arith.constant 0 : index
    %c0_28 = arith.constant 0 : index
    %54 = vector.load %arg9[%c0_27, %c0_28] : memref<1x128xf32, #tpu.memory_space<vmem>>, vector<1x128xf32>
    %55 = vector.broadcast %54 : vector<1x128xf32> to vector<128x128xf32>
    %56 = arith.addf %53, %55 : vector<128x128xf32>
    %c0_29 = arith.constant 0 : index
    %c0_30 = arith.constant 0 : index
    %c0_31 = arith.constant 0 : index
    %57 = vector.load %arg10[%c0_29, %c0_30, %c0_31] : memref<1x128x128xf32, #tpu.memory_space<vmem>>, vector<1x128x128xf32>
    %58 = vector.shape_cast %57 : vector<1x128x128xf32> to vector<128x128xf32>
    %59 = vector.shape_cast %56 : vector<128x128xf32> to vector<1x128x128xf32>
    tpu.vector_store %arg10[%c0_29, %c0_30, %c0_31], %59 {strides = array<i32>} : memref<1x128x128xf32, #tpu.memory_space<vmem>>, vector<1x128x128xf32>,
    return
  }
  func.func @transform_0(%arg0: i32) -> (i32, i32, i32) {
    %c0_i32 = arith.constant 0 : i32
    %c0_i32_0 = arith.constant 0 : i32
    %c0_i32_1 = arith.constant 0 : i32
    return %arg0, %c0_i32, %c0_i32_0 : i32, i32, i32
  }
  func.func @transform_1(%arg0: i32) -> (i32, i32) {
    %c0_i32 = arith.constant 0 : i32
    %c0_i32_0 = arith.constant 0 : i32
    %c0_i32_1 = arith.constant 0 : i32
    return %c0_i32, %c0_i32_0 : i32, i32
  }
  func.func @transform_2(%arg0: i32) -> (i32, i32) {
    %c0_i32 = arith.constant 0 : i32
    %c0_i32_0 = arith.constant 0 : i32
    %c0_i32_1 = arith.constant 0 : i32
    return %c0_i32, %c0_i32_0 : i32, i32
  }
  func.func @transform_3(%arg0: i32) -> (i32, i32) {
    %c0_i32 = arith.constant 0 : i32
    %c0_i32_0 = arith.constant 0 : i32
    %c0_i32_1 = arith.constant 0 : i32
    return %c0_i32, %c0_i32_0 : i32, i32
  }
  func.func @transform_4(%arg0: i32) -> (i32, i32) {
    %c0_i32 = arith.constant 0 : i32
    %c0_i32_0 = arith.constant 0 : i32
    %c0_i32_1 = arith.constant 0 : i32
    return %c0_i32, %c0_i32_0 : i32, i32
  }
  func.func @transform_5(%arg0: i32) -> (i32, i32) {
    %c0_i32 = arith.constant 0 : i32
    %c0_i32_0 = arith.constant 0 : i32
    %c0_i32_1 = arith.constant 0 : i32
    return %c0_i32, %c0_i32_0 : i32, i32
  }
  func.func @transform_6(%arg0: i32) -> (i32, i32) {
    %c0_i32 = arith.constant 0 : i32
    %c0_i32_0 = arith.constant 0 : i32
    %c0_i32_1 = arith.constant 0 : i32
    return %c0_i32, %c0_i32_0 : i32, i32
  }
  func.func @transform_7(%arg0: i32) -> (i32, i32) {
    %c0_i32 = arith.constant 0 : i32
    %c0_i32_0 = arith.constant 0 : i32
    %c0_i32_1 = arith.constant 0 : i32
    return %c0_i32, %c0_i32_0 : i32, i32
  }
  func.func @transform_8(%arg0: i32) -> (i32, i32) {
    %c0_i32 = arith.constant 0 : i32
    %c0_i32_0 = arith.constant 0 : i32
    %c0_i32_1 = arith.constant 0 : i32
    return %c0_i32, %c0_i32_0 : i32, i32
  }
  func.func @transform_9(%arg0: i32) -> (i32, i32, i32) {
    %c0_i32 = arith.constant 0 : i32
    %c0_i32_0 = arith.constant 0 : i32
    %c0_i32_1 = arith.constant 0 : i32
    return %arg0, %c0_i32, %c0_i32_0 : i32, i32, i32
  }
}

</mosaic_0001>

<bundles_post_ra>
// kernel: tpu_custom_call.1
= control target key start
LH: loop header
LB: loop body
LE: loop exit
PB: predicated region body
PF: predicated region fallthrough
CT: control target
= control target key end

     0   :  { %s3136_s0 = inlined_call_operand.hbm [shape: f32[2,128,128], index: 0, kind: input, shape index: {}]   ;;  %s3137_s1 = inlined_call_operand.hbm [shape: f32[128,256], index: 1, kind: input, shape index: {}]   ;;  %s3138_s2 = inlined_call_operand.vmem [shape: f32[1,256], index: 2, kind: input, shape index: {}]   ;;  %s3139_s3 = inlined_call_operand.vmem [shape: f32[1,128], index: 3, kind: input, shape index: {}]   ;;  %s3140_s4 = inlined_call_operand.vmem [shape: f32[1,128], index: 4, kind: input, shape index: {}]   ;;  %s3141_s5 = inlined_call_operand.vmem [shape: f32[128,128], index: 5, kind: input, shape index: {}]   ;;  %s3142_s6 = inlined_call_operand.vmem [shape: f32[128,1], index: 6, kind: input, shape index: {}]   ;;  %s3143_s7 = inlined_call_operand.hbm [shape: f32[128,128], index: 7, kind: input, shape index: {}]   ;;  %s3144_s8 = inlined_call_operand.vmem [shape: f32[1,128], index: 8, kind: input, shape index: {}]   ;;  %s3145_s9 = inlined_call_operand.hbm [shape: f32[2,128,128], index: 9, kind: output, shape index: {}]  }
   0x1   :  { %3152 = sst [smem:[#allocation13_spill]] %s3137_s1 }
   0x2   :  { %3153 = sst [smem:[#allocation14_spill]] %s3143_s7 }
   0x3   :  { %14 = vsyncpa [#allocation3], 0 }
   0x4   :  { %16 = vsyncpa [#allocation3 + $0x1], 0 }
   0x5   :  { %17 = vsyncpa [#allocation6], 0 }
   0x6   :  { %18 = vsyncpa [#allocation4], 0 }
   0x7   :  { %20 = vsyncpa [#allocation4 + $0x1], 0  ;;  %s2260_s30 = smov 0   ;;  %s2262_s10 = smov 0  }
   0x8   :  { %s2264_s11 = smov 0   ;;  %s2266_s12 = smov 0  }
   0x9 LB: > { %s2281_s13 = sadd.s32 4294967295, %s2196_s12   ;;  %s1675_s14 = sadd.s32 4294967294, %s2196_s12   ;;  %s2196_s12 = sphi %s2266_s12, %s3177_s12   ;;  %s2192_s11 = sphi %s2264_s11, %s3176_s11   ;;  %s2188_s10 = sphi %s2262_s10, %s3175_s10   ;;  %s2184_s30 = sphi %s2260_s30, %s3174_s30  }
   0xa   : > { %p46_p0 = scmp.ne.s32.totalorder %s2188_s10, %s2184_s30  ;;  %p3146_p1 = scmp.eq.s32.totalorder %s2281_s13, 0 }
   0xb   : > { %p244_p3 = scmp.eq.s32.totalorder %s1675_s14, 1  ;;  %p1676_p5 = scmp.ge.s32.totalorder %s2196_s12, 1 }
   0xc   : > { %p2290_p4 = por %p3146_p1, %p46_p0  ;;  %p251_p7 = scmp.lt.s32.totalorder %s2196_s12, 3 }
   0xd   : > { %p2295_p6 = por %p244_p3, %p46_p0  ;;  %s2198_s18 = smov [#allocation5]  }
   0xe   : > { %s3154_s15 = scalar_select %p2290_p4, 1, 0 }
   0xf   : > { %s3155_s16 = scalar_select %p2295_p6, 1, 0 }
  0x10   : > { %p2300_p8 = pnand %p1676_p5, %p251_p7  ;;  %s263_s19 = sshll.u32 %s2198_s18, 4  ;;  %s264_s19 = int_to_ptr.vmem [resolvable:$true] %s263_s19 }
  0x11   : > { %s2199_s21 = smov [#allocation7]   ;;  %s2059_s23 = scalar_lea.vmem %s264_s19, 4096 }
  0x12   : > { %s3156_s17 = scalar_select %p2300_p8, 1, 0 }
  0x13   : > { %p1886_p9 = pneg %p2300_p8  ;;  %s291_s22 = sshll.u32 %s2199_s21, 4  ;;  %s292_s22 = int_to_ptr.vmem [resolvable:$true] %s291_s22 }
  0x14   : > { %p2060_p13 = scmp.ne.s32.totalorder %s264_s19, %s2059_s23  ;;  %p2067_p5 = scmp.lt.s32.totalorder %s264_s19, %s264_s19 }
  0x15   : > { %p2309_p11 = pnand %p1886_p9, %p3146_p1  ;;  %p2068_p7 = scmp.lt.s32.totalorder %s2059_s23, %s2059_s23 }
  0x17   : > { %p2050_p12 = pneg %p2309_p11  ;;  %p2069_p10 = por %p2068_p7, %p2067_p5 }
  0x19   : > { %p2062_p0 = pnand %p2060_p13, %p2050_p12 }
  0x1b   : > { %p2063_p3 = pneg %p2062_p0 }
  0x1d   : > { %p2070_p9 = pnand %p2069_p10, %p2063_p3 }
  0x1f   : > { %2073 = shalt.err (!%p2070_p9)
}
  0x20   : > { %s2200_s24 = smov 256   ;;  %s2201_s25 = smov 16  }
  0x21   : > { %s3158_s1 = sld [smem:[#allocation13_spill]]  ;;  %s2085_s28 = scalar_lea.vmem %s292_s22, 2048 }
  0x22   : > { %p2086_p1 = scmp.ne.s32.totalorder %s292_s22, %s2085_s28  ;;  %p2093_p2 = scmp.lt.s32.totalorder %s292_s22, %s292_s22 }
  0x23   : > { %p2094_p6 = scmp.lt.s32.totalorder %s2085_s28, %s2085_s28 }
  0x24   : > { %p2088_p13 = pnand %p2086_p1, %p2050_p12 }
  0x25   : > { %p2095_p5 = por %p2094_p6, %p2093_p2 }
  0x26   : > { %p2089_p0 = pneg %p2088_p13 }
  0x27   : > { %1889 = dma.hbm_to_vmem [thread:$0]  (!%p2309_p11), %s3158_s1, 4096, %s264_s19, [#allocation6], %s2200_s24, %s2200_s24, %s2201_s25  }
  0x28   : > { %p2096_p10 = pnand %p2095_p5, %p2089_p0 }
  0x2a   : > { %2099 = shalt.err (!%p2096_p10)
}
  0x2b   : > { %s3147_s29 = smov 128   ;;  %s3148_s14 = smov 8  }
  0x2c   : > { %s3159_s7 = sld [smem:[#allocation14_spill]]  ;;  %s2335_s21 = sadd.s32 1, %s2196_s12  }
  0x2d   : > { %s30_s23 = ssub.s32 %s2196_s12, %s2335_s21  ;;  %s33_s24 = sadd.s32 1, %s2192_s11 }
  0x2e   : > { %p31_p1 = scmp.eq.s32.totalorder %s30_s23, 0  ;;  %p40_p2 = scmp.ne.s32.totalorder %s2192_s11, %s2188_s10 }
  0x2f   : > { %p41_p6 = scmp.eq.s32.totalorder %s2196_s12, 0  ;;  %p3161_p3 = scmp.eq.s32.totalorder %s2281_s13, 1 }
  0x30   : > { %s2344_s25 = scalar_select %p31_p1, %s2192_s11, %s33_s24  }
  0x31   : > { %p42_p12 = por %p41_p6, %p40_p2  ;;  %p2348_p7 = por %p3161_p3, %p40_p2 }
  0x32   : > { %1892 = dma.hbm_to_vmem [thread:$0]  (!%p2309_p11), %s3159_s7, 2048, %s292_s22, [#allocation6], %s3147_s29, %s3147_s29, %s3148_s14  }
  0x33   : > { %3160 = sst [smem:[#allocation12_spill]] %s2344_s25  ;;  %p1903_p9 = scmp.lt.s32.totalorder %s2196_s12, 2 }
  0x34   : > { %s3162_s20 = scalar_select %p2348_p7, 1, 0 }
  0x35   : > { %s308_s26 = sand.u32 1, %s2192_s11   ;;  %s1696_s22 = sshll.u32 %s2196_s12, 11 }
  0x36   : > { %s1680_s27 = sshll.u32 %s308_s26, 7  ;;  %s2358_s19 = scalar_lea.hbm %s3136_s0, %s1696_s22 }
  0x37   : > { %s312_s23 = scalar_lea.vmem [#allocation2], %s1680_s27  ;;  %p2362_p11 = pnand %p1903_p9, %p42_p12 }
  0x38   : > { %s319_s24 = sshll.u32 %s312_s23, 4  ;;  %s2366_s14 = scalar_lea.sflag [#allocation3], %s308_s26  ;;  %s2360_s24 = int_to_ptr.vmem [resolvable:$true] %s319_s24 }
  0x39   : > { %s2100_s1 = scalar_lea.hbm %s2358_s19, 2048  ;;  %p2102_p0 = pneg %p2362_p11 }
  0x3a   : > { %p2101_p13 = scmp.ne.s32.totalorder %s2358_s19, %s2100_s1  ;;  %s2105_s27 = scalar_lea.hbm %s3136_s0, 4096 }
  0x3b   : > { %p2106_p1 = scmp.lt.s32.totalorder %s2358_s19, %s3136_s0  ;;  %p2107_p2 = scmp.lt.s32.totalorder %s2105_s27, %s2100_s1 }
  0x3c   : > { %p2103_p5 = pnand %p2102_p0, %p2101_p13 }
  0x3d   : > { %p2108_p6 = por %p2107_p2, %p2106_p1 }
  0x3e   : > { %p2104_p10 = pneg %p2103_p5 }
  0x40   : > { %p2109_p12 = pnand %p2108_p6, %p2104_p10 }
  0x42   : > { %2112 = shalt.err (!%p2109_p12)
}
  0x43   : > { %s2113_s26 = scalar_lea.vmem %s2360_s24, 2048  ;;  %s2204_s7 = smov [#allocation2]  }
  0x44   : > { %p2114_p3 = scmp.ne.s32.totalorder %s2360_s24, %s2113_s26  ;;  %s2118_s25 = sshll.u32 %s2204_s7, 4  ;;  %s2119_s25 = int_to_ptr.vmem [resolvable:$false] %s2118_s25 }
  0x45   : > { %s2120_s22 = scalar_lea.vmem %s2119_s25, 4096  ;;  %p2121_p5 = scmp.lt.s32.totalorder %s2360_s24, %s2119_s25 }
  0x46   : > { %p2116_p9 = pnand %p2114_p3, %p2102_p0  ;;  %p2122_p7 = scmp.lt.s32.totalorder %s2120_s22, %s2113_s26 }
  0x48   : > { %p2117_p13 = pneg %p2116_p9  ;;  %p2123_p4 = por %p2122_p7, %p2121_p5 }
  0x4a   : > { %p2124_p8 = pnand %p2123_p4, %p2117_p13 }
  0x4c   : > { %2127 = shalt.err (!%p2124_p8)
}
  0x4d   : > { %s3164_s1 = smov 8   ;;  %s3165_s28 = smov 128  }
  0x4e   : > { %1896 = dma.hbm_to_vmem [thread:$0]  (!%p2362_p11), %s2358_s19, 2048, %s2360_s24, %s2366_s14, %s3165_s28, %s3165_s28, %s3164_s1  }
  0x4f   : > { %p3166_p0 = scmp.ne.s32.totalorder %s3156_s17, 0 }
  0x50   : > { %s2393_s7 = sand.u32 (!%p3166_p0), 1, %s2188_s10   ;;  %p3167_p4 = scmp.ne.s32.totalorder (!%p3166_p0), %s3154_s15, 0 }
  0x51   : > { %331 = sbr.rel (%p3166_p0) target bundleno = 1188 (0x4a4), region = 56  ;;  %s1684_s25 = sshll.u32 (!%p3166_p0), %s2393_s7, 7 }
  0x52   : > { %s334_s27 = scalar_lea.sflag (!%p3166_p0), [#allocation3], %s2393_s7  ;;  %s2399_s29 = scalar_lea.vmem (!%p3166_p0), [#allocation2], %s1684_s25 }
  0x56   : > { %2171 = dma.done.wait (%p3167_p4), %s334_s27, 2048  }
  0x57   : > { %2173 = vsyncadd (%p3167_p4), %s334_s27, 4294965248  ;;  %p3168_p8 = scmp.eq.s32.totalorder %s2281_s13, 0 }
  0x59   : > { %2175 = dma.done.wait (%p3168_p8), [#allocation6], 6144   ;;  %p3169_p7 = pmov %p3168_p8 }
  0x5a   : > { %v2205_v0 = vmov 0.0   ;;  %v427_v1 = vld [vmem:[#allocation5 + $0xf8] sm:$0xff]  ;;  %v426_v2 = vld [vmem:[#allocation5 + $0xf0] sm:$0xff]  ;;  %v425_v3 = vld [vmem:[#allocation5 + $0xe8] sm:$0xff]  ;;  %s3068_s1 = scalar_lea.vmem [#allocation8], %s1684_s25  ;;  %s1697_s25 = sshll.u32 %s2281_s13, 11 }
  0x5b   : > { %2177 = vsyncadd (%p3169_p7), [#allocation6], 4294961152  ;;  %504 = vmatprep.mubr.f32.mxu0 %v2205_v0  ;;  %440 = vmatprep.subr.mxu0 %v427_v1  ;;  %v424_v4 = vld [vmem:[#allocation5 + $0xe0] sm:$0xff]  ;;  %v423_v5 = vld [vmem:[#allocation5 + $0xd8] sm:$0xff]  ;;  %s1583_s28 = sshll.u32 %s3068_s1, 4  ;;  %s3089_s15 = scalar_lea.hbm %s3145_s9, %s1697_s25  ;;  %s3091_s28 = int_to_ptr.vmem [resolvable:$true] %s1583_s28 }
  0x5c   : > { %441 = vmatpush1.msra.mxu0 %v426_v2  ;;  %v422_v6 = vld [vmem:[#allocation5 + $0xd0] sm:$0xff]  ;;  %v421_v7 = vld [vmem:[#allocation5 + $0xc8] sm:$0xff]  ;;  %v420_v8 = vld [vmem:[#allocation5 + $0xc0] sm:$0xff]  ;;  %v430_v2 = vlaneseq  ;;  %s1570_s17 = scalar_lea.sflag [#allocation4], %s2393_s7  ;;  %s2128_s13 = scalar_lea.vmem %s3091_s28, 2048 }
  0x5d   : > { %442 = vmatprep.subr.mxu0 %v425_v3  ;;  %v419_v9 = vld [vmem:[#allocation5 + $0xb8] sm:$0xff]  ;;  %v418_v10 = vld [vmem:[#allocation5 + $0xb0] sm:$0xff]  ;;  %v417_v11 = vld [vmem:[#allocation5 + $0xa8] sm:$0xff]  ;;  %p2129_p11 = scmp.ne.s32.totalorder %s3091_s28, %s2128_s13  ;;  %p3170_p10 = scmp.ne.s32.totalorder %s3162_s20, 0 }
  0x5e   : > { %443 = vmatpush1.msra.mxu0 %v424_v4  ;;  %v416_v12 = vld [vmem:[#allocation5 + $0xa0] sm:$0xff]  ;;  %v415_v13 = vld [vmem:[#allocation5 + $0x98] sm:$0xff]  ;;  %v414_v14 = vld [vmem:[#allocation5 + $0x90] sm:$0xff]  ;;  %s2207_s14 = smov [#allocation8]  }
  0x5f   : > { %444 = vmatprep.subr.mxu0 %v423_v5  ;;  %v413_v15 = vld [vmem:[#allocation5 + $0x88] sm:$0xff]  ;;  %v412_v16 = vld [vmem:[#allocation5 + $0x80] sm:$0xff]  ;;  %v411_v17 = vld [vmem:[#allocation5 + $0x78] sm:$0xff]  ;;  %v2469_v5 = vshrl.u32 %v430_v2, 7  ;;  %p2130_p1 = pnand %p2129_p11, %p3170_p10  ;;  %s2132_s19 = sshll.u32 %s2207_s14, 4  ;;  %s2133_s19 = int_to_ptr.vmem [resolvable:$false] %s2132_s19 }
  0x60   : > { %445 = vmatpush1.msra.mxu0 %v422_v6  ;;  %v410_v18 = vld [vmem:[#allocation5 + $0x70] sm:$0xff]  ;;  %v409_v19 = vld [vmem:[#allocation5 + $0x68] sm:$0xff]  ;;  %v408_v20 = vld [vmem:[#allocation5 + $0x60] sm:$0xff]  ;;  %s2134_s24 = scalar_lea.vmem %s2133_s19, 4096  ;;  %p2135_p6 = scmp.lt.s32.totalorder %s3091_s28, %s2133_s19 }
  0x61   : > { %446 = vmatprep.subr.mxu0 %v421_v7  ;;  %v407_v21 = vld [vmem:[#allocation5 + $0x58] sm:$0xff]  ;;  %v406_v22 = vld [vmem:[#allocation5 + $0x50] sm:$0xff]  ;;  %v405_v23 = vld [vmem:[#allocation5 + $0x48] sm:$0xff]  ;;  %v436_v7 = vsub.s32 1, %v2469_v5  ;;  %p2131_p2 = pneg %p2130_p1  ;;  %p2136_p12 = scmp.lt.s32.totalorder %s2134_s24, %s2128_s13 }
  0x62   : > { %447 = vmatpush1.msra.mxu0 %v420_v8  ;;  %v404_v24 = vld [vmem:[#allocation5 + $0x40] sm:$0xff]  ;;  %v403_v25 = vld [vmem:[#allocation5 + $0x38] sm:$0xff]  ;;  %v402_v26 = vld [vmem:[#allocation5 + $0x30] sm:$0xff] }
  0x63   : > { %448 = vmatprep.subr.mxu0 %v419_v9  ;;  %v401_v27 = vld [vmem:[#allocation5 + $0x28] sm:$0xff]  ;;  %v400_v28 = vld [vmem:[#allocation5 + $0x20] sm:$0xff]  ;;  %v399_v29 = vld [vmem:[#allocation5 + $0x18] sm:$0xff]  ;;  %p2137_p3 = por %p2136_p12, %p2135_p6 }
  0x64   : > { %449 = vmatpush1.msra.mxu0 %v418_v10  ;;  %v398_v30 = vld [vmem:[#allocation5 + $0x10] sm:$0xff]  ;;  %v397_v31 = vld [vmem:[#allocation5 + $0x8] sm:$0xff]  ;;  %v396_v32 = vld [vmem:[#allocation5] sm:$0xff] }
  0x65   : > { %450 = vmatprep.subr.mxu0 %v417_v11  ;;  %v380_v33 = vld [vmem:[%s2399_s29] sm:$0xff]  ;;  %v381_v34 = vld [vmem:[%s2399_s29 + $0x8] sm:$0xff]  ;;  %v382_v35 = vld [vmem:[%s2399_s29 + $0x10] sm:$0xff]  ;;  %p2138_p9 = pnand %p2137_p3, %p2131_p2 }
  0x66   : > { %451 = vmatpush1.msra.mxu0 %v416_v12  ;;  %v383_v36 = vld [vmem:[%s2399_s29 + $0x18] sm:$0xff]  ;;  %v384_v37 = vld [vmem:[%s2399_s29 + $0x20] sm:$0xff]  ;;  %v385_v38 = vld [vmem:[%s2399_s29 + $0x28] sm:$0xff] }
  0x67   : > { %452 = vmatprep.subr.mxu0 %v415_v13  ;;  %v386_v39 = vld [vmem:[%s2399_s29 + $0x30] sm:$0xff]  ;;  %v387_v40 = vld [vmem:[%s2399_s29 + $0x38] sm:$0xff]  ;;  %v388_v41 = vld [vmem:[%s2399_s29 + $0x40] sm:$0xff] }
  0x68   : > { %453 = vmatpush1.msra.mxu0 %v414_v14  ;;  %v389_v42 = vld [vmem:[%s2399_s29 + $0x48] sm:$0xff]  ;;  %v390_v43 = vld [vmem:[%s2399_s29 + $0x50] sm:$0xff]  ;;  %v391_v44 = vld [vmem:[%s2399_s29 + $0x58] sm:$0xff] }
  0x69   : > { %454 = vmatprep.subr.mxu0 %v413_v15  ;;  %v392_v45 = vld [vmem:[%s2399_s29 + $0x60] sm:$0xff]  ;;  %v393_v46 = vld [vmem:[%s2399_s29 + $0x68] sm:$0xff]  ;;  %v394_v47 = vld [vmem:[%s2399_s29 + $0x70] sm:$0xff] }
  0x6a   : > { %455 = vmatpush1.msra.mxu0 %v412_v16  ;;  %v395_v48 = vld [vmem:[%s2399_s29 + $0x78] sm:$0xff]  ;;  %v428_v10 = vld [vmem:[%s3138_s2] sm:$0x3] }
  0x6b   : > { %456 = vmatprep.subr.mxu0 %v411_v17  ;;  %v2477_v11 = vrot.slane %v428_v10, %v436_v7 }
  0x6c   : > { %457 = vmatpush1.msra.mxu0 %v410_v18 }
  0x6d   : > { %458 = vmatprep.subr.mxu0 %v409_v19 }
  0x6e   : > { %459 = vmatpush1.msra.mxu0 %v408_v20 }
  0x6f   : > { %460 = vmatprep.subr.mxu0 %v407_v21 }
  0x70   : > { %461 = vmatpush1.msra.mxu0 %v406_v22 }
  0x71   : > { %462 = vmatprep.subr.mxu0 %v405_v23 }
  0x72   : > { %463 = vmatpush1.msra.mxu0 %v404_v24 }
  0x73   : > { %464 = vmatprep.subr.mxu0 %v403_v25 }
  0x74   : > { %465 = vmatpush1.msra.mxu0 %v402_v26 }
  0x75   : > { %466 = vmatprep.subr.mxu0 %v401_v27 }
  0x76   : > { %467 = vmatpush1.msra.mxu0 %v400_v28 }
  0x77   : > { %468 = vmatprep.subr.mxu0 %v399_v29 }
  0x78   : > { %469 = vmatpush1.msra.mxu0 %v398_v30 }
  0x79   : > { %470 = vmatprep.subr.mxu0 %v397_v31 }
  0x7a   : > { %471 = vmatpush1.msra.mxu0 %v396_v32 }
  0x7b   : > { %505 = vmatmul.mubr.f32.vlgmr.msra.gmra.mxu0 %v380_v33 }
  0x7c   : > { %510 = vmatprep.mubr.f32.mxu0 %v2205_v0 }
  0x7f   : > { %511 = vmatmul.mubr.f32.gmra.mxu0 %v381_v34 }
  0x80   : > { %516 = vmatprep.mubr.f32.mxu0 %v2205_v0 }
  0x83   : > { %517 = vmatmul.mubr.f32.gmra.mxu0 %v382_v35 }
  0x84   : > { %522 = vmatprep.mubr.f32.mxu0 %v2205_v0 }
  0x87   : > { %523 = vmatmul.mubr.f32.gmra.mxu0 %v383_v36 }
  0x88   : > { %528 = vmatprep.mubr.f32.mxu0 %v2205_v0 }
  0x8b   : > { %529 = vmatmul.mubr.f32.gmra.mxu0 %v384_v37 }
  0x8c   : > { %534 = vmatprep.mubr.f32.mxu0 %v2205_v0 }
  0x8f   : > { %535 = vmatmul.mubr.f32.gmra.mxu0 %v385_v38 }
  0x90   : > { %540 = vmatprep.mubr.f32.mxu0 %v2205_v0 }
  0x93   : > { %541 = vmatmul.mubr.f32.gmra.mxu0 %v386_v39 }
  0x94   : > { %546 = vmatprep.mubr.f32.mxu0 %v2205_v0 }
  0x97   : > { %547 = vmatmul.mubr.f32.gmra.mxu0 %v387_v40 }
  0x98   : > { %552 = vmatprep.mubr.f32.mxu0 %v2205_v0 }
  0x9b   : > { %553 = vmatmul.mubr.f32.gmra.mxu0 %v388_v41 }
  0x9c   : > { %558 = vmatprep.mubr.f32.mxu0 %v2205_v0 }
  0x9f   : > { %559 = vmatmul.mubr.f32.gmra.mxu0 %v389_v42 }
  0xa0   : > { %564 = vmatprep.mubr.f32.mxu0 %v2205_v0 }
  0xa3   : > { %565 = vmatmul.mubr.f32.gmra.mxu0 %v390_v43 }
  0xa4   : > { %570 = vmatprep.mubr.f32.mxu0 %v2205_v0 }
  0xa7   : > { %571 = vmatmul.mubr.f32.gmra.mxu0 %v391_v44 }
  0xa8   : > { %576 = vmatprep.mubr.f32.mxu0 %v2205_v0 }
  0xab   : > { %577 = vmatmul.mubr.f32.gmra.mxu0 %v392_v45 }
  0xac   : > { %582 = vmatprep.mubr.f32.mxu0 %v2205_v0 }
  0xaf   : > { %583 = vmatmul.mubr.f32.gmra.mxu0 %v393_v46 }
  0xb0   : > { %588 = vmatprep.mubr.f32.mxu0 %v2205_v0 }
  0xb3   : > { %589 = vmatmul.mubr.f32.gmra.mxu0 %v394_v47 }
  0xb4   : > { %594 = vmatprep.mubr.f32.mxu0 %v2205_v0 }
  0xb7   : > { %595 = vmatmul.mubr.f32.gmra.mxu0 %v395_v48 }
 0x13b   : > { %v2441_v49 = vpop.f32.mrf.mxu0 }
 0x13d   : > { %v2443_v50 = vpop.f32.mrf.mxu0 }
 0x13e   : > { %v2550_v10 = vadd.f32 %v2443_v50, %v2477_v11 }
 0x13f   : > { %v2445_v51 = vpop.f32.mrf.mxu0 }
 0x141   : > { %v2447_v52 = vpop.f32.mrf.mxu0 }
 0x143   : > { %v2449_v53 = vpop.f32.mrf.mxu0 }
 0x145   : > { %v520_v54 = vpop.f32.mrf.mxu0 }
 0x146   : > { %v2527_v41 = vadd.f32 %v520_v54, %v2477_v11 }
 0x147   : > { %v2451_v55 = vpop.f32.mrf.mxu0 }
 0x149   : > { %v2453_v56 = vpop.f32.mrf.mxu0 }
 0x14b   : > { %v2455_v57 = vpop.f32.mrf.mxu0 }
 0x14d   : > { %v532_v58 = vpop.f32.mrf.mxu0 }
 0x14e   : > { %v2509_v29 = vadd.f32 %v532_v58, %v2477_v11 }
 0x14f   : > { %v2457_v59 = vpop.f32.mrf.mxu0 }
 0x150   : > { %v642_v42 = vmul.f32 0.044715, %v2509_v29 }
 0x151   : > { %v2459_v60 = vpop.f32.mrf.mxu0 }
 0x153   : > { %v2461_v61 = vpop.f32.mrf.mxu0 }
 0x155   : > { %v544_v62 = vpop.f32.mrf.mxu0 }
 0x156   : > { %v2498_v23 = vadd.f32 %v544_v62, %v2477_v11 }
 0x157   : > { %v2463_v63 = vpop.f32.mrf.mxu0 }
 0x158   : > { %v646_v33 = vmul.f32 0.044715, %v2498_v23 }
 0x159   : > { %v550_v0 = vpop.f32.mrf.mxu0 }
 0x15a   : > { %v2534_v45 = vadd.f32 %v550_v0, %v2477_v11 }
 0x15b   : > { %v2465_v1 = vpop.f32.mrf.mxu0 }
 0x15d   : > { %v556_v3 = vpop.f32.mrf.mxu0 }
 0x15e   : > { %v2487_v16 = vadd.f32 %v556_v3, %v2477_v11  ;;  %v678_v3 = vmul.f32 %v646_v33, %v2498_v23 }
 0x15f   : > { %v2467_v4 = vpop.f32.mrf.mxu0 }
 0x160   : > { %v650_v21 = vmul.f32 0.044715, %v2487_v16  ;;  %v710_v50 = vmul.f32 %v678_v3, %v2498_v23 }
 0x161   : > { %v562_v6 = vpop.f32.mrf.mxu0 }
 0x162   : > { %v682_v32 = vmul.f32 %v650_v21, %v2487_v16  ;;  %v2517_v34 = vadd.f32 %v562_v6, %v2477_v11  ;;  %v648_v21 = vmul.f32 0.044715, %v2534_v45 }
 0x163   : > { %v2472_v8 = vpop.f32.mrf.mxu0 }
 0x164   : > { %v714_v48 = vmul.f32 %v682_v32, %v2487_v16  ;;  %v652_v58 = vmul.f32 0.044715, %v2517_v34 }
 0x165   : > { %v568_v9 = vpop.f32.mrf.mxu0 }
 0x166   : > { %v2482_v13 = vadd.f32 %v568_v9, %v2477_v11 }
 0x167   : > { %v2479_v12 = vpop.f32.mrf.mxu0 }
 0x168   : > { %v654_v17 = vmul.f32 0.044715, %v2482_v13 }
 0x169   : > { %v574_v14 = vpop.f32.mrf.mxu0 }
 0x16a   : > { %v686_v25 = vmul.f32 %v654_v17, %v2482_v13  ;;  %v2502_v26 = vadd.f32 %v574_v14, %v2477_v11  ;;  %v638_v14 = vmul.f32 0.044715, %v2527_v41  ;;  %v2555_v17 = vadd.f32 %v2459_v60, %v2477_v11 }
 0x16b   : > { %v2484_v15 = vpop.f32.mrf.mxu0 }
 0x16c   : > { %v718_v37 = vmul.f32 %v686_v25, %v2482_v13  ;;  %v656_v38 = vmul.f32 0.044715, %v2502_v26  ;;  %v746_v25 = vadd.f32 %v714_v48, %v2487_v16 }
 0x16d   : > { %v580_v18 = vpop.f32.mrf.mxu0 }
 0x16e   : > { %v2491_v19 = vadd.f32 %v580_v18, %v2477_v11  ;;  %v750_v2 = vadd.f32 %v718_v37, %v2482_v13  ;;  %v688_v9 = vmul.f32 %v656_v38, %v2502_v26  ;;  %v674_v18 = vmul.f32 %v642_v42, %v2509_v29 }
 0x16f   : > { %v2493_v20 = vpop.f32.mrf.mxu0  ;;  %v644_v38 = vmul.f32 0.044715, %v2555_v17  ;;  %v778_v42 = vmul.f32 0.7978846, %v746_v25 }
 0x170   : > { %v658_v22 = vmul.f32 0.044715, %v2491_v19  ;;  %v782_v32 = vmul.f32 0.7978846, %v750_v2  ;;  %v720_v33 = vmul.f32 %v688_v9, %v2502_v26  ;;  %v706_v48 = vmul.f32 %v674_v18, %v2509_v29 }
 0x171   : > { %v586_v24 = vpop.f32.mrf.mxu0  ;;  %v2583_v2 = vadd.f32 %v2447_v52, %v2477_v11 }
 0x172   : > { %v2505_v27 = vadd.f32 %v586_v24, %v2477_v11  ;;  %v690_v28 = vmul.f32 %v658_v22, %v2491_v19  ;;  %v738_v18 = vadd.f32 %v706_v48, %v2509_v29 }
 0x173   : > { %v2511_v30 = vpop.f32.mrf.mxu0 }
 0x174   : > { %v660_v31 = vmul.f32 0.044715, %v2505_v27  ;;  %v722_v36 = vmul.f32 %v690_v28, %v2491_v19 }
 0x175   : > { %v592_v35 = vpop.f32.mrf.mxu0 }
 0x176   : > { %v2523_v39 = vadd.f32 %v592_v35, %v2477_v11  ;;  %v692_v40 = vmul.f32 %v660_v31, %v2505_v27  ;;  %v754_v44 = vadd.f32 %v722_v36, %v2491_v19  ;;  %v684_v31 = vmul.f32 %v652_v58, %v2517_v34 }
 0x177   : > { %v2530_v43 = vpop.f32.mrf.mxu0  ;;  %v634_v35 = vmul.f32 0.044715, %v2550_v10  ;;  %v2569_v36 = vadd.f32 %v2453_v56, %v2477_v11  ;;  %v680_v58 = vmul.f32 %v648_v21, %v2534_v45  ;;  %v752_v56 = vadd.f32 %v720_v33, %v2502_v26 }
 0x178   : > { %v662_v46 = vmul.f32 0.044715, %v2523_v39  ;;  %v724_v47 = vmul.f32 %v692_v40, %v2505_v27  ;;  %v786_v54 = vmul.f32 0.7978846, %v754_v44  ;;  %v670_v44 = vmul.f32 %v638_v14, %v2527_v41 }
 0x179   : > { %v598_v62 = vpop.f32.mrf.mxu0  ;;  %v666_v3 = vmul.f32 %v634_v35, %v2550_v10  ;;  %v676_v21 = vmul.f32 %v644_v38, %v2555_v17  ;;  %v712_v52 = vmul.f32 %v680_v58, %v2534_v45  ;;  %v628_v38 = vmul.f32 0.5, %v2505_v27 }
 0x17a   : > { %v2543_v6 = vadd.f32 %v598_v62, %v2477_v11  ;;  %v756_v0 = vadd.f32 %v724_v47, %v2505_v27  ;;  %v694_v7 = vmul.f32 %v662_v46, %v2523_v39  ;;  %1951 = vtanh.f32 %v786_v54 }
 0x17b   : > { %v742_v47 = vadd.f32 %v710_v50, %v2498_v23  ;;  %v716_v54 = vmul.f32 %v684_v31, %v2517_v34  ;;  %v702_v9 = vmul.f32 %v670_v44, %v2527_v41  ;;  %v636_v11 = vmul.f32 0.044715, %v2583_v2 }
 0x17c   : > { %v664_v22 = vmul.f32 0.044715, %v2543_v6  ;;  %v788_v24 = vmul.f32 0.7978846, %v756_v0  ;;  %v726_v28 = vmul.f32 %v694_v7, %v2523_v39  ;;  %v640_v0 = vmul.f32 0.044715, %v2569_v36 }
 0x17d   : > { %v774_v14 = vmul.f32 0.7978846, %v742_v47  ;;  %v734_v25 = vadd.f32 %v702_v9, %v2527_v41  ;;  %v770_v50 = vmul.f32 0.7978846, %v738_v18  ;;  %v708_v31 = vmul.f32 %v676_v21, %v2555_v17 }
 0x17e   : > { %1953 = vtanh.f32 %v788_v24  ;;  %v696_v60 = vmul.f32 %v664_v22, %v2543_v6  ;;  %v758_v37 = vadd.f32 %v726_v28, %v2523_v39  ;;  %v784_v22 = vmul.f32 0.7978846, %v752_v56 }
 0x17f   : > { %1955 = vtanh.f32 %v782_v32  ;;  %v748_v24 = vadd.f32 %v716_v54, %v2517_v34  ;;  %v698_v28 = vmul.f32 %v666_v3, %v2550_v10  ;;  %v744_v35 = vadd.f32 %v712_v52, %v2534_v45 }
 0x180   : > { %v728_v40 = vmul.f32 %v696_v60, %v2543_v6  ;;  %v790_v46 = vmul.f32 0.7978846, %v758_v37  ;;  %1957 = vtanh.f32 %v778_v42  ;;  %v672_v60 = vmul.f32 %v640_v0, %v2569_v36 }
 0x181   : > { %v780_v33 = vmul.f32 0.7978846, %v748_v24  ;;  %v730_v42 = vadd.f32 %v698_v28, %v2550_v10  ;;  %v668_v44 = vmul.f32 %v636_v11, %v2583_v2  ;;  %v740_v47 = vadd.f32 %v708_v31, %v2555_v17 }
 0x182   : > { %v760_v62 = vadd.f32 %v728_v40, %v2543_v6  ;;  %1959 = vtanh.f32 %v790_v46  ;;  %v766_v46 = vmul.f32 0.7978846, %v734_v25  ;;  %v704_v48 = vmul.f32 %v672_v60, %v2569_v36 }
 0x183   : > { %v776_v56 = vmul.f32 0.7978846, %v744_v35  ;;  %v626_v27 = vmul.f32 0.5, %v2491_v19  ;;  %v762_v3 = vmul.f32 0.7978846, %v730_v42  ;;  %v632_v52 = vmul.f32 0.5, %v2543_v6 }
 0x184   : > { %v792_v7 = vmul.f32 0.7978846, %v760_v62  ;;  %v736_v9 = vadd.f32 %v704_v48, %v2569_v36  ;;  %v622_v19 = vmul.f32 0.5, %v2482_v13  ;;  %v630_v6 = vmul.f32 0.5, %v2523_v39 }
 0x185   : > { %v618_v13 = vmul.f32 0.5, %v2487_v16  ;;  %v624_v48 = vmul.f32 0.5, %v2502_v26  ;;  %v614_v39 = vmul.f32 0.5, %v2498_v23 }
 0x186   : > { %1961 = vtanh.f32 %v792_v7  ;;  %v772_v7 = vmul.f32 0.7978846, %v740_v47  ;;  %v768_v25 = vmul.f32 0.7978846, %v736_v9 }
 0x187   : > { %1963 = vtanh.f32 %v774_v14  ;;  %v1952_v32 = vpop.eup %1951  ;;  %v700_v14 = vmul.f32 %v668_v44, %v2583_v2 }
 0x188   : > { %1965 = vtanh.f32 %v784_v22  ;;  %v850_v62 = vadd.f32 1.0, %v1952_v32 }
 0x189   : > { %1967 = vtanh.f32 %v770_v50  ;;  %v732_v28 = vadd.f32 %v700_v14, %v2583_v2 }
 0x18a   : > { %1969 = vtanh.f32 %v780_v33  ;;  %v2609_v21 = vmul.f32 %v850_v62, %v626_v27 }
 0x18b   : > { %v1954_v37 = vpop.eup %1953  ;;  %1971 = vtanh.f32 %v766_v46 }
 0x18c   : > { %v852_v40 = vadd.f32 1.0, %v1954_v37  ;;  %v1956_v54 = vpop.eup %1955  ;;  %1973 = vtanh.f32 %v776_v56  ;;  %v764_v37 = vmul.f32 0.7978846, %v732_v28  ;;  %v612_v28 = vmul.f32 0.5, %v2555_v17 }
 0x18d   : > { %v1958_v0 = vpop.eup %1957  ;;  %v846_v22 = vadd.f32 1.0, %v1956_v54  ;;  %1975 = vtanh.f32 %v762_v3  ;;  %v604_v17 = vmul.f32 0.5, %v2583_v2 }
 0x18e   : > { %v2603_v58 = vmul.f32 %v852_v40, %v628_v38  ;;  %1977 = vtanh.f32 %v772_v7  ;;  %v842_v33 = vadd.f32 1.0, %v1958_v0  ;;  %v620_v0 = vmul.f32 0.5, %v2517_v34 }
 0x18f   : > { %v1960_v18 = vpop.eup %1959  ;;  %v2617_v60 = vmul.f32 %v846_v22, %v622_v19  ;;  %1979 = vtanh.f32 %v768_v25  ;;  %v610_v7 = vmul.f32 0.5, %v2509_v29 }
 0x190   : > { %915 = vadd.xlane.f32.xlu1 %v2603_v58  ;;  %v854_v32 = vadd.f32 1.0, %v1960_v18  ;;  %v2625_v42 = vmul.f32 %v842_v33, %v618_v13  ;;  %1981 = vtanh.f32 %v764_v37 }
 0x192   : > { %v2623_v40 = vmul.f32 %v854_v32, %v630_v6 }
 0x193   : > { %v1962_v24 = vpop.eup %1961 }
 0x194   : > { %913 = vadd.xlane.f32.xlu1 %v2609_v21  ;;  %v856_v11 = vadd.f32 1.0, %v1962_v24  ;;  %v1964_v50 = vpop.eup %1963  ;;  %v616_v24 = vmul.f32 0.5, %v2534_v45 }
 0x195   : > { %v1966_v35 = vpop.eup %1965  ;;  %v838_v46 = vadd.f32 1.0, %v1964_v50  ;;  %v602_v50 = vmul.f32 0.5, %v2550_v10 }
 0x196   : > { %v2615_v31 = vmul.f32 %v856_v11, %v632_v52  ;;  %v1968_v38 = vpop.eup %1967  ;;  %v848_v44 = vadd.f32 1.0, %v1966_v35  ;;  %v606_v52 = vmul.f32 0.5, %v2527_v41  ;;  %v608_v41 = vmul.f32 0.5, %v2569_v36 }
 0x197   : > { %v1970_v47 = vpop.eup %1969  ;;  %v2633_v56 = vmul.f32 %v838_v46, %v614_v39  ;;  %v834_v27 = vadd.f32 1.0, %v1968_v38 }
 0x198   : > { %919 = vadd.xlane.f32.xlu0 %v2615_v31  ;;  %909 = vadd.xlane.f32.xlu1 %v2617_v60  ;;  %v1972_v16 = vpop.eup %1971  ;;  %v2631_v62 = vmul.f32 %v848_v44, %v624_v48  ;;  %v844_v54 = vadd.f32 1.0, %v1970_v47 }
 0x199   : > { %v1974_v3 = vpop.eup %1973  ;;  %v2639_v14 = vmul.f32 %v834_v27, %v610_v7  ;;  %v830_v22 = vadd.f32 1.0, %v1972_v16 }
 0x19a   : > { %v1976_v26 = vpop.eup %1975  ;;  %v876_v23 = vmul.f32 %v844_v54, %v620_v0  ;;  %v840_v18 = vadd.f32 1.0, %v1974_v3 }
 0x19b   : > { %v1978_v9 = vpop.eup %1977  ;;  %v2644_v25 = vmul.f32 %v830_v22, %v606_v52  ;;  %v826_v29 = vadd.f32 1.0, %v1976_v26 }
 0x19c   : > { %917 = vadd.xlane.f32.xlu0 %v2623_v40  ;;  %905 = vadd.xlane.f32.xlu1 %v2625_v42  ;;  %v1980_v11 = vpop.eup %1979  ;;  %v872_v19 = vmul.f32 %v840_v18, %v616_v24  ;;  %v836_v34 = vadd.f32 1.0, %v1978_v9 }
 0x19d   : > { %v1982_v32 = vpop.eup %1981  ;;  %v2651_v35 = vmul.f32 %v826_v29, %v602_v50  ;;  %v832_v45 = vadd.f32 1.0, %v1980_v11 }
 0x19e   : > { %v2649_v33 = vmul.f32 %v836_v34, %v612_v28  ;;  %v828_v13 = vadd.f32 1.0, %v1982_v32 }
 0x19f   : > { %v2656_v6 = vmul.f32 %v832_v45, %v608_v41 }
 0x1a0   : > { %911 = vadd.xlane.f32.xlu0 %v2631_v62  ;;  %901 = vadd.xlane.f32.xlu1 %v2633_v56  ;;  %v2660_v10 = vmul.f32 %v828_v13, %v604_v17 }
 0x1a4   : > { %907 = vadd.xlane.f32.xlu0 %v876_v23  ;;  %897 = vadd.xlane.f32.xlu1 %v2639_v14 }
 0x1a8   : > { %903 = vadd.xlane.f32.xlu0 %v872_v19  ;;  %893 = vadd.xlane.f32.xlu1 %v2644_v25 }
 0x1ac   : > { %899 = vadd.xlane.f32.xlu0 %v2649_v33  ;;  %889 = vadd.xlane.f32.xlu1 %v2651_v35 }
 0x1b0   : > { %895 = vadd.xlane.f32.xlu0 %v2656_v6 }
 0x1b4   : > { %891 = vadd.xlane.f32.xlu0 %v2660_v10 }
 0x219   : > { %v916_v37 = vpop.xlane.xlu1 %915 }
 0x21a   : > { %v935_v47 = vmul.f32 0.0078125, %v916_v37 }
 0x21c   : > { %v2667_v54 = vsub.f32 %v2603_v58, %v935_v47 }
 0x21d   : > { %v914_v38 = vpop.xlane.xlu1 %913 }
 0x21e   : > { %v934_v27 = vmul.f32 0.0078125, %v914_v38  ;;  %v967_v58 = vmul.f32 %v2667_v54, %v2667_v54 }
 0x221   : > { %v920_v44 = vpop.xlane.xlu0 %919  ;;  %v910_v46 = vpop.xlane.xlu1 %909 }
 0x222   : > { %v937_v48 = vmul.f32 0.0078125, %v920_v44  ;;  %v932_v7 = vmul.f32 0.0078125, %v910_v46 }
 0x224   : > { %v2664_v39 = vsub.f32 %v2615_v31, %v937_v48  ;;  %v2675_v31 = vsub.f32 %v2609_v21, %v934_v27 }
 0x225   : > { %v918_v36 = vpop.xlane.xlu0 %917  ;;  %v906_v16 = vpop.xlane.xlu1 %905 }
 0x226   : > { %v936_v2 = vmul.f32 0.0078125, %v918_v36  ;;  %v969_v3 = vmul.f32 %v2664_v39, %v2664_v39  ;;  %v930_v11 = vmul.f32 0.0078125, %v906_v16  ;;  %v966_v29 = vmul.f32 %v2675_v31, %v2675_v31 }
 0x228   : > { %v2672_v0 = vsub.f32 %v2623_v40, %v936_v2  ;;  %1000 = vadd.xlane.f32.xlu0 %v969_v3  ;;  %v2685_v40 = vsub.f32 %v2617_v60, %v932_v7  ;;  %v2696_v60 = vsub.f32 %v2625_v42, %v930_v11 }
 0x229   : > { %v912_v26 = vpop.xlane.xlu0 %911  ;;  %v902_v9 = vpop.xlane.xlu1 %901 }
 0x22a   : > { %v933_v18 = vmul.f32 0.0078125, %v912_v26  ;;  %v968_v22 = vmul.f32 %v2672_v0, %v2672_v0  ;;  %v964_v32 = vmul.f32 %v2685_v40, %v2685_v40  ;;  %v928_v45 = vmul.f32 0.0078125, %v902_v9 }
 0x22b   : > { %v962_v47 = vmul.f32 %v2696_v60, %v2696_v60 }
 0x22c   : > { %v2682_v24 = vsub.f32 %v2631_v62, %v933_v18  ;;  %996 = vadd.xlane.f32.xlu0 %v967_v58  ;;  %998 = vadd.xlane.f32.xlu1 %v968_v22  ;;  %v2703_v44 = vsub.f32 %v2633_v56, %v928_v45  ;;  %v1137_v45 = vld [vmem:[%s3142_s6 + $0x48] sm:$0xff] }
 0x22d   : > { %v908_v52 = vpop.xlane.xlu0 %907  ;;  %v898_v28 = vpop.xlane.xlu1 %897 }
 0x22e   : > { %v931_v34 = vmul.f32 0.0078125, %v908_v52  ;;  %v965_v21 = vmul.f32 %v2682_v24, %v2682_v24  ;;  %v960_v2 = vmul.f32 %v2703_v44, %v2703_v44 }
 0x230   : > { %v2691_v50 = vsub.f32 %v876_v23, %v931_v34  ;;  %992 = vadd.xlane.f32.xlu0 %v965_v21  ;;  %994 = vadd.xlane.f32.xlu1 %v966_v29  ;;  %v926_v23 = vmul.f32 0.0078125, %v898_v28  ;;  %v2206_v34 = vmov 0   ;;  %v1130_v21 = vld [vmem:[%s3142_s6 + $0x10] sm:$0xff]  ;;  %v1131_v29 = vld [vmem:[%s3142_s6 + $0x18] sm:$0xff]  ;;  %v1132_v28 = vld [vmem:[%s3142_s6 + $0x20] sm:$0xff] }
 0x231   : > { %v904_v62 = vpop.xlane.xlu0 %903  ;;  %v894_v37 = vpop.xlane.xlu1 %893  ;;  %1950 = vset.pattern.permute.xlu1 %v2206_v34  ;;  %1949 = vset.pattern.permute.xlu0 %v2206_v34 }
 0x232   : > { %v929_v41 = vmul.f32 0.0078125, %v904_v62  ;;  %v963_v13 = vmul.f32 %v2691_v50, %v2691_v50  ;;  %v924_v16 = vmul.f32 0.0078125, %v894_v37  ;;  %v1128_v62 = vld [vmem:[%s3142_s6] sm:$0xff]  ;;  %v1141_v37 = vld [vmem:[%s3142_s6 + $0x68] sm:$0xff] }
 0x234   : > { %v2700_v17 = vsub.f32 %v872_v19, %v929_v41  ;;  %988 = vadd.xlane.f32.xlu0 %v963_v13  ;;  %990 = vadd.xlane.f32.xlu1 %v964_v32  ;;  %v2713_v19 = vsub.f32 %v2639_v14, %v926_v23  ;;  %v2725_v26 = vsub.f32 %v2644_v25, %v924_v16  ;;  %v1133_v32 = vld [vmem:[%s3142_s6 + $0x28] sm:$0xff]  ;;  %v1134_v41 = vld [vmem:[%s3142_s6 + $0x30] sm:$0xff]  ;;  %v1139_v13 = vld [vmem:[%s3142_s6 + $0x58] sm:$0xff] }
 0x235   : > { %v900_v38 = vpop.xlane.xlu0 %899  ;;  %v890_v3 = vpop.xlane.xlu1 %889  ;;  %v1135_v23 = vld [vmem:[%s3142_s6 + $0x38] sm:$0xff] }
 0x236   : > { %v927_v46 = vmul.f32 0.0078125, %v900_v38  ;;  %v961_v42 = vmul.f32 %v2700_v17, %v2700_v17  ;;  %v958_v14 = vmul.f32 %v2713_v19, %v2713_v19  ;;  %v922_v9 = vmul.f32 0.0078125, %v890_v3  ;;  %v1136_v38 = vld [vmem:[%s3142_s6 + $0x40] sm:$0xff] }
 0x237   : > { %v956_v25 = vmul.f32 %v2725_v26, %v2725_v26 }
 0x238   : > { %v2710_v48 = vsub.f32 %v2649_v33, %v927_v46  ;;  %984 = vadd.xlane.f32.xlu0 %v961_v42  ;;  %986 = vadd.xlane.f32.xlu1 %v962_v47  ;;  %v1143_v46 = vld [vmem:[%s3142_s6 + $0x78] sm:$0xff]  ;;  %v1138_v42 = vld [vmem:[%s3142_s6 + $0x50] sm:$0xff]  ;;  %v1140_v47 = vld [vmem:[%s3142_s6 + $0x60] sm:$0xff] }
 0x239   : > { %v896_v36 = vpop.xlane.xlu0 %895 }
 0x23a   : > { %v925_v27 = vmul.f32 0.0078125, %v896_v36  ;;  %v959_v56 = vmul.f32 %v2710_v48, %v2710_v48  ;;  %v1142_v36 = vld [vmem:[%s3142_s6 + $0x70] sm:$0xff] }
 0x23c   : > { %v2720_v7 = vsub.f32 %v2656_v6, %v925_v27  ;;  %980 = vadd.xlane.f32.xlu0 %v959_v56  ;;  %982 = vadd.xlane.f32.xlu1 %v960_v2  ;;  %v2733_v6 = vsub.f32 %v2651_v35, %v922_v9  ;;  %v1129_v35 = vld [vmem:[%s3142_s6 + $0x8] sm:$0xff] }
 0x23d   : > { %v892_v33 = vpop.xlane.xlu0 %891 }
 0x23e   : > { %v923_v18 = vmul.f32 0.0078125, %v892_v33  ;;  %v957_v58 = vmul.f32 %v2720_v7, %v2720_v7  ;;  %v954_v11 = vmul.f32 %v2733_v6, %v2733_v6 }
 0x240   : > { %v2730_v22 = vsub.f32 %v2660_v10, %v923_v18  ;;  %976 = vadd.xlane.f32.xlu0 %v957_v58  ;;  %978 = vadd.xlane.f32.xlu1 %v958_v14  ;;  %v1112_v10 = vld [vmem:[%s3141_s5] sm:$0xff] }
 0x241   : > { %1794 = vmatprep.mubr.f32.mxu1 %v1112_v10 }
 0x242   : > { %v955_v52 = vmul.f32 %v2730_v22, %v2730_v22 }
 0x244   : > { %972 = vadd.xlane.f32.xlu0 %v955_v52  ;;  %974 = vadd.xlane.f32.xlu1 %v956_v25 }
 0x248   : > { %970 = vadd.xlane.f32.xlu1 %v954_v11 }
 0x259   : > { %1151 = vperm.xlu1 %1950, %v1129_v35  }
 0x25a   : > { %1146 = vperm.xlu0 %1949, %v1128_v62  }
 0x25d   : > { %1156 = vperm.xlu1 %1950, %v1130_v21  }
 0x25e   : > { %1191 = vperm.xlu0 %1949, %v1137_v45  }
 0x261   : > { %1161 = vperm.xlu1 %1950, %v1131_v29  }
 0x262   : > { %1201 = vperm.xlu0 %1949, %v1139_v13  }
 0x265   : > { %1166 = vperm.xlu1 %1950, %v1132_v28  }
 0x266   : > { %1211 = vperm.xlu0 %1949, %v1141_v37  }
 0x269   : > { %1171 = vperm.xlu1 %1950, %v1133_v32  }
 0x26a   : > { %1221 = vperm.xlu0 %1949, %v1143_v46  }
 0x26d   : > { %1176 = vperm.xlu1 %1950, %v1134_v41  }
 0x271   : > { %1181 = vperm.xlu1 %1950, %v1135_v23  }
 0x275   : > { %1186 = vperm.xlu1 %1950, %v1136_v38   ;;  %v2795_v38 = vld [vmem:[%s3139_s3] ss:$0 sm:$0xff] }
 0x279   : > { %1196 = vperm.xlu1 %1950, %v1138_v42  }
 0x27d   : > { %1206 = vperm.xlu1 %1950, %v1140_v47  }
 0x281   : > { %1216 = vperm.xlu1 %1950, %v1142_v36  }
 0x2b1   : > { %v1001_v16 = vpop.xlane.xlu0 %1000 }
 0x2b2   : > { %v1017_v27 = vmul.f32 0.0078125, %v1001_v16 }
 0x2b4   : > { %v1033_v56 = vadd.f32 1e-05, %v1017_v27  ;;  %v2801_v27 = vld [vmem:[%s3140_s4] ss:$0 sm:$0xff] }
 0x2b5   : > { %v997_v2 = vpop.xlane.xlu0 %996  ;;  %v999_v3 = vpop.xlane.xlu1 %998 }
 0x2b6   : > { %1983 = vrsqrt.f32 %v1033_v56  ;;  %v1015_v33 = vmul.f32 0.0078125, %v997_v2  ;;  %v1016_v14 = vmul.f32 0.0078125, %v999_v3 }
 0x2b8   : > { %v1031_v9 = vadd.f32 1e-05, %v1015_v33  ;;  %v1032_v18 = vadd.f32 1e-05, %v1016_v14 }
 0x2b9   : > { %v993_v58 = vpop.xlane.xlu0 %992  ;;  %v995_v52 = vpop.xlane.xlu1 %994 }
 0x2ba   : > { %1985 = vrsqrt.f32 %v1031_v9  ;;  %v1013_v25 = vmul.f32 0.0078125, %v993_v58  ;;  %v1014_v11 = vmul.f32 0.0078125, %v995_v52 }
 0x2bb   : > { %1987 = vrsqrt.f32 %v1032_v18 }
 0x2bc   : > { %v1029_v10 = vadd.f32 1e-05, %v1013_v25  ;;  %v1030_v35 = vadd.f32 1e-05, %v1014_v11 }
 0x2bd   : > { %v989_v34 = vpop.xlane.xlu0 %988  ;;  %v991_v21 = vpop.xlane.xlu1 %990 }
 0x2be   : > { %1989 = vrsqrt.f32 %v1029_v10  ;;  %v1011_v29 = vmul.f32 0.0078125, %v989_v34  ;;  %v1012_v28 = vmul.f32 0.0078125, %v991_v21 }
 0x2bf   : > { %1991 = vrsqrt.f32 %v1030_v35 }
 0x2c0   : > { %v1027_v62 = vadd.f32 1e-05, %v1011_v29  ;;  %v1028_v32 = vadd.f32 1e-05, %v1012_v28 }
 0x2c1   : > { %v985_v45 = vpop.xlane.xlu0 %984  ;;  %v987_v41 = vpop.xlane.xlu1 %986 }
 0x2c2   : > { %1993 = vrsqrt.f32 %v1027_v62  ;;  %v1009_v13 = vmul.f32 0.0078125, %v985_v45  ;;  %v1010_v23 = vmul.f32 0.0078125, %v987_v41 }
 0x2c3   : > { %v1984_v37 = vpop.eup %1983  ;;  %1995 = vrsqrt.f32 %v1028_v32 }
 0x2c4   : > { %v1025_v46 = vadd.f32 1e-05, %v1009_v13  ;;  %v1026_v42 = vadd.f32 1e-05, %v1010_v23  ;;  %v1065_v47 = vmul.f32 %v1984_v37, %v2664_v39 }
 0x2c5   : > { %v981_v36 = vpop.xlane.xlu0 %980  ;;  %v983_v16 = vpop.xlane.xlu1 %982 }
 0x2c6   : > { %1997 = vrsqrt.f32 %v1025_v46  ;;  %v1007_v56 = vmul.f32 0.0078125, %v981_v36  ;;  %v1008_v2 = vmul.f32 0.0078125, %v983_v16  ;;  %v1088_v3 = vmul.f32 %v2795_v38, %v1065_v47 }
 0x2c7   : > { %v1986_v33 = vpop.eup %1985  ;;  %1999 = vrsqrt.f32 %v1026_v42 }
 0x2c8   : > { %v1988_v14 = vpop.eup %1987  ;;  %v1023_v9 = vadd.f32 1e-05, %v1007_v56  ;;  %v1024_v18 = vadd.f32 1e-05, %v1008_v2  ;;  %v1111_v58 = vadd.f32 %v2801_v27, %v1088_v3  ;;  %v1063_v39 = vmul.f32 %v1986_v33, %v2667_v54 }
 0x2c9   : > { %v977_v52 = vpop.xlane.xlu0 %976  ;;  %v979_v25 = vpop.xlane.xlu1 %978  ;;  %v1064_v11 = vmul.f32 %v1988_v14, %v2672_v0 }
 0x2ca   : > { %2001 = vrsqrt.f32 %v1023_v9  ;;  %v1005_v10 = vmul.f32 0.0078125, %v977_v52  ;;  %v1006_v35 = vmul.f32 0.0078125, %v979_v25  ;;  %1762 = vmatprep.subr.mxu1 %v1111_v58  ;;  %v1086_v29 = vmul.f32 %v2795_v38, %v1063_v39 }
 0x2cb   : > { %v1990_v34 = vpop.eup %1989  ;;  %2003 = vrsqrt.f32 %v1024_v18  ;;  %1763 = vmatpush3.msra.mxu1 %v1111_v58  ;;  %v1087_v21 = vmul.f32 %v2795_v38, %v1064_v11 }
 0x2cc   : > { %v1992_v28 = vpop.eup %1991  ;;  %v1021_v62 = vadd.f32 1e-05, %v1005_v10  ;;  %v1022_v32 = vadd.f32 1e-05, %v1006_v35  ;;  %v1061_v54 = vmul.f32 %v1990_v34, %v2682_v24  ;;  %v1109_v42 = vadd.f32 %v2801_v27, %v1086_v29 }
 0x2cd   : > { %v973_v45 = vpop.xlane.xlu0 %972  ;;  %v975_v41 = vpop.xlane.xlu1 %974  ;;  %v1110_v0 = vadd.f32 %v2801_v27, %v1087_v21  ;;  %v1062_v13 = vmul.f32 %v1992_v28, %v2675_v31 }
 0x2ce   : > { %2005 = vrsqrt.f32 %v1021_v62  ;;  %v1003_v23 = vmul.f32 0.0078125, %v973_v45  ;;  %v1004_v37 = vmul.f32 0.0078125, %v975_v41  ;;  %v1084_v36 = vmul.f32 %v2795_v38, %v1061_v54 }
 0x2cf   : > { %v1994_v46 = vpop.eup %1993  ;;  %2007 = vrsqrt.f32 %v1022_v32  ;;  %1764 = vmatprep.subr.mxu1 %v1110_v0  ;;  %v1085_v47 = vmul.f32 %v2795_v38, %v1062_v13 }
 0x2d0   : > { %v1996_v16 = vpop.eup %1995  ;;  %v1019_v24 = vadd.f32 1e-05, %v1003_v23  ;;  %v1020_v56 = vadd.f32 1e-05, %v1004_v37  ;;  %1765 = vmatpush3.msra.mxu1 %v1110_v0  ;;  %v1059_v2 = vmul.f32 %v1994_v46, %v2691_v50  ;;  %v1107_v18 = vadd.f32 %v2801_v27, %v1084_v36 }
 0x2d1   : > { %1766 = vmatprep.subr.mxu1 %v1109_v42  ;;  %v971_v31 = vpop.xlane.xlu1 %970  ;;  %v1108_v3 = vadd.f32 %v2801_v27, %v1085_v47  ;;  %v1060_v33 = vmul.f32 %v1996_v16, %v2685_v40 }
 0x2d2   : > { %2009 = vrsqrt.f32 %v1019_v24  ;;  %1767 = vmatpush3.msra.mxu1 %v1109_v42  ;;  %v1002_v14 = vmul.f32 0.0078125, %v971_v31  ;;  %v1082_v39 = vmul.f32 %v2795_v38, %v1059_v2 }
 0x2d3   : > { %v1998_v9 = vpop.eup %1997  ;;  %2011 = vrsqrt.f32 %v1020_v56  ;;  %1768 = vmatprep.subr.mxu1 %v1108_v3  ;;  %v1083_v58 = vmul.f32 %v2795_v38, %v1060_v33  ;;  %v1113_v33 = vld [vmem:[%s3141_s5 + $0x8] sm:$0xff] }
 0x2d4   : > { %v2000_v52 = vpop.eup %1999  ;;  %v1018_v50 = vadd.f32 1e-05, %v1002_v14  ;;  %1769 = vmatpush3.msra.mxu1 %v1108_v3  ;;  %v1057_v25 = vmul.f32 %v1998_v9, %v2700_v17  ;;  %v1105_v35 = vadd.f32 %v2801_v27, %v1082_v39  ;;  %v1400_v14 = vld [vmem:[#allocation7 + $0x78] sm:$0xff]  ;;  %v1398_v9 = vld [vmem:[#allocation7 + $0x68] sm:$0xff] }
 0x2d5   : > { %1770 = vmatprep.subr.mxu1 %v1107_v18  ;;  %v1106_v40 = vadd.f32 %v2801_v27, %v1083_v58  ;;  %v1058_v11 = vmul.f32 %v2000_v52, %v2696_v60  ;;  %v1397_v58 = vld [vmem:[#allocation7 + $0x60] sm:$0xff]  ;;  %v1117_v39 = vld [vmem:[%s3141_s5 + $0x28] sm:$0xff]  ;;  %v1396_v52 = vld [vmem:[#allocation7 + $0x58] sm:$0xff] }
 0x2d6   : > { %2013 = vrsqrt.f32 %v1018_v50  ;;  %1771 = vmatpush3.msra.mxu1 %v1107_v18  ;;  %v1080_v21 = vmul.f32 %v2795_v38, %v1057_v25  ;;  %v1116_v18 = vld [vmem:[%s3141_s5 + $0x20] sm:$0xff]  ;;  %v1118_v50 = vld [vmem:[%s3141_s5 + $0x30] sm:$0xff] }
 0x2d7   : > { %v2002_v10 = vpop.eup %2001  ;;  %1772 = vmatprep.subr.mxu1 %v1106_v40  ;;  %v1081_v34 = vmul.f32 %v2795_v38, %v1058_v11  ;;  %v1395_v25 = vld [vmem:[#allocation7 + $0x50] sm:$0xff]  ;;  %v1394_v11 = vld [vmem:[#allocation7 + $0x48] sm:$0xff] }
 0x2d8   : > { %v2004_v29 = vpop.eup %2003  ;;  %1773 = vmatpush3.msra.mxu1 %v1106_v40  ;;  %v1055_v28 = vmul.f32 %v2002_v10, %v2710_v48  ;;  %v1103_v32 = vadd.f32 %v2801_v27, %v1080_v21  ;;  %v1119_v40 = vld [vmem:[%s3141_s5 + $0x38] sm:$0xff]  ;;  %v1120_v10 = vld [vmem:[%s3141_s5 + $0x40] sm:$0xff] }
 0x2d9   : > { %1774 = vmatprep.subr.mxu1 %v1105_v35  ;;  %v1104_v17 = vadd.f32 %v2801_v27, %v1081_v34  ;;  %v1056_v62 = vmul.f32 %v2004_v29, %v2703_v44  ;;  %v1121_v34 = vld [vmem:[%s3141_s5 + $0x48] sm:$0xff]  ;;  %v1392_v21 = vld [vmem:[#allocation7 + $0x38] sm:$0xff]  ;;  %v1122_v29 = vld [vmem:[%s3141_s5 + $0x50] sm:$0xff] }
 0x2da   : > { %1775 = vmatpush3.msra.mxu1 %v1105_v35  ;;  %v1078_v45 = vmul.f32 %v2795_v38, %v1055_v28  ;;  %v1393_v35 = vld [vmem:[#allocation7 + $0x40] sm:$0xff]  ;;  %v1391_v28 = vld [vmem:[#allocation7 + $0x30] sm:$0xff] }
 0x2db   : > { %v2006_v60 = vpop.eup %2005  ;;  %1776 = vmatprep.subr.mxu1 %v1104_v17  ;;  %v1079_v54 = vmul.f32 %v2795_v38, %v1056_v62  ;;  %v1390_v62 = vld [vmem:[#allocation7 + $0x28] sm:$0xff] }
 0x2dc   : > { %v2008_v41 = vpop.eup %2007  ;;  %1777 = vmatpush3.msra.mxu1 %v1104_v17  ;;  %v1053_v0 = vmul.f32 %v2006_v60, %v2720_v7  ;;  %v1101_v23 = vadd.f32 %v2801_v27, %v1078_v45  ;;  %v1123_v17 = vld [vmem:[%s3141_s5 + $0x58] sm:$0xff]  ;;  %v1124_v60 = vld [vmem:[%s3141_s5 + $0x60] sm:$0xff] }
 0x2dd   : > { %1778 = vmatprep.subr.mxu1 %v1103_v32  ;;  %v1102_v48 = vadd.f32 %v2801_v27, %v1079_v54  ;;  %v1054_v13 = vmul.f32 %v2008_v41, %v2713_v19  ;;  %v1125_v54 = vld [vmem:[%s3141_s5 + $0x68] sm:$0xff]  ;;  %v1388_v45 = vld [vmem:[#allocation7 + $0x18] sm:$0xff]  ;;  %v1126_v41 = vld [vmem:[%s3141_s5 + $0x70] sm:$0xff] }
 0x2de   : > { %1779 = vmatpush3.msra.mxu1 %v1103_v32  ;;  %v1076_v46 = vmul.f32 %v2795_v38, %v1053_v0  ;;  %v1389_v32 = vld [vmem:[#allocation7 + $0x20] sm:$0xff]  ;;  %v1127_v0 = vld [vmem:[%s3141_s5 + $0x78] sm:$0xff] }
 0x2df   : > { %v2010_v44 = vpop.eup %2009  ;;  %1780 = vmatprep.subr.mxu1 %v1102_v48  ;;  %v1077_v37 = vmul.f32 %v2795_v38, %v1054_v13  ;;  %v1386_v13 = vld [vmem:[#allocation7 + $0x8] sm:$0xff] }
 0x2e0   : > { %v2012_v42 = vpop.eup %2011  ;;  %1781 = vmatpush3.msra.mxu1 %v1102_v48  ;;  %v1051_v47 = vmul.f32 %v2010_v44, %v2730_v22  ;;  %v1099_v16 = vadd.f32 %v2801_v27, %v1076_v46  ;;  %v1387_v48 = vld [vmem:[#allocation7 + $0x10] sm:$0xff]  ;;  %v1385_v44 = vld [vmem:[#allocation7] sm:$0xff] }
 0x2e1   : > { %1782 = vmatprep.subr.mxu1 %v1101_v23  ;;  %v1100_v7 = vadd.f32 %v2801_v27, %v1077_v37  ;;  %v1052_v36 = vmul.f32 %v2012_v42, %v2725_v26  ;;  %v2047_v37 = vld [vmem:[%s3138_s2] sm:$0x3] }
 0x2e2   : > { %1783 = vmatpush3.msra.mxu1 %v1101_v23  ;;  %v1074_v56 = vmul.f32 %v2795_v38, %v1051_v47  ;;  %v432_v23 = vsub.s32 0, %v2469_v5 }
 0x2e3   : > { %v2014_v19 = vpop.eup %2013  ;;  %1784 = vmatprep.subr.mxu1 %v1100_v7  ;;  %v1075_v24 = vmul.f32 %v2795_v38, %v1052_v36 }
 0x2e4   : > { %1785 = vmatpush3.msra.mxu1 %v1100_v7  ;;  %v1050_v2 = vmul.f32 %v2014_v19, %v2733_v6  ;;  %v1097_v26 = vadd.f32 %v2801_v27, %v1074_v56  ;;  %v1114_v6 = vld [vmem:[%s3141_s5 + $0x10] sm:$0xff]  ;;  %v2899_v46 = vrot.slane %v2047_v37, %v432_v23 }
 0x2e5   : > { %1786 = vmatprep.subr.mxu1 %v1099_v16  ;;  %v1098_v22 = vadd.f32 %v2801_v27, %v1075_v24 }
 0x2e6   : > { %1787 = vmatpush3.msra.mxu1 %v1099_v16  ;;  %v1073_v31 = vmul.f32 %v2795_v38, %v1050_v2  ;;  %v1399_v38 = vld [vmem:[#allocation7 + $0x70] sm:$0xff]  ;;  %v2903_v42 = vadd.f32 %v2441_v49, %v2899_v46  ;;  %v2907_v47 = vadd.f32 %v2445_v51, %v2899_v46  ;;  %v2912_v36 = vadd.f32 %v2449_v53, %v2899_v46 }
 0x2e7   : > { %1788 = vmatprep.subr.mxu1 %v1098_v22  ;;  %v2917_v19 = vadd.f32 %v2451_v55, %v2899_v46  ;;  %v2923_v51 = vadd.f32 %v2457_v59, %v2899_v46  ;;  %v2929_v53 = vadd.f32 %v2455_v57, %v2899_v46  ;;  %v2938_v59 = vadd.f32 %v2463_v63, %v2899_v46 }
 0x2e8   : > { %1789 = vmatpush3.msra.mxu1 %v1098_v22  ;;  %v1096_v3 = vadd.f32 %v2801_v27, %v1073_v31  ;;  %v1115_v27 = vld [vmem:[%s3141_s5 + $0x18] sm:$0xff]  ;;  %v633_v7 = vmul.f32 0.044715, %v2903_v42  ;;  %v635_v5 = vmul.f32 0.044715, %v2907_v47  ;;  %v2945_v57 = vadd.f32 %v2461_v61, %v2899_v46 }
 0x2e9   : > { %1790 = vmatprep.subr.mxu1 %v1097_v26  ;;  %v637_v49 = vmul.f32 0.044715, %v2912_v36  ;;  %v639_v56 = vmul.f32 0.044715, %v2917_v19  ;;  %v643_v55 = vmul.f32 0.044715, %v2923_v51  ;;  %v2957_v61 = vadd.f32 %v2465_v1, %v2899_v46 }
 0x2ea   : > { %1791 = vmatpush3.msra.mxu1 %v1097_v26  ;;  %v665_v16 = vmul.f32 %v633_v7, %v2903_v42  ;;  %v667_v24 = vmul.f32 %v635_v5, %v2907_v47  ;;  %v641_v26 = vmul.f32 0.044715, %v2929_v53  ;;  %v3001_v37 = vadd.f32 %v2511_v30, %v2899_v46 }
 0x2eb   : > { %1792 = vmatprep.subr.mxu1 %v1096_v3  ;;  %v669_v2 = vmul.f32 %v637_v49, %v2912_v36  ;;  %v671_v31 = vmul.f32 %v639_v56, %v2917_v19  ;;  %v3012_v30 = vadd.f32 %v2530_v43, %v2899_v46 }
 0x2ec   : > { %1793 = vmatpush3.msra.mxu1 %v1096_v3  ;;  %v697_v22 = vmul.f32 %v665_v16, %v2903_v42  ;;  %v2940_v3 = vpop.permute.xlu1 %1151 }
 0x2ed   : > { %1795 = vmatmul.mubr.f32.vlgmr.msra.gmra.mxu1 %v1113_v33  ;;  %1818 = vmatprep.subr.mxu1 %v1400_v14  ;;  %v699_v33 = vmul.f32 %v667_v24, %v2907_v47  ;;  %v663_v43 = vmul.f32 0.044715, %v3012_v30 }
 0x2ee   : > { %1797 = vmatprep.mubr.f32.mxu1 %v1114_v6  ;;  %1819 = vmatpush3.msra.mxu1 %v1400_v14  ;;  %v675_v14 = vmul.f32 %v643_v55, %v2923_v51  ;;  %v729_v6 = vadd.f32 %v697_v22, %v2903_v42  ;;  %v661_v22 = vmul.f32 0.044715, %v3001_v37 }
 0x2ef   : > { %1820 = vmatprep.subr.mxu1 %v1399_v38  ;;  %v731_v63 = vadd.f32 %v699_v33, %v2907_v47 }
 0x2f0   : > { %1821 = vmatpush3.msra.mxu1 %v1399_v38  ;;  %v701_v38 = vmul.f32 %v669_v2, %v2912_v36 }
 0x2f1   : > { %1798 = vmatmul.mubr.f32.gmra.mxu1 %v1115_v27  ;;  %1822 = vmatprep.subr.mxu1 %v1398_v9  ;;  %v673_v27 = vmul.f32 %v641_v26, %v2929_v53 }
 0x2f2   : > { %1800 = vmatprep.mubr.f32.mxu1 %v1116_v18  ;;  %1823 = vmatpush3.msra.mxu1 %v1398_v9  ;;  %v647_v9 = vmul.f32 0.044715, %v2938_v59  ;;  %v703_v18 = vmul.f32 %v671_v31, %v2917_v19 }
 0x2f3   : > { %1824 = vmatprep.subr.mxu1 %v1397_v58 }
 0x2f4   : > { %1825 = vmatpush3.msra.mxu1 %v1397_v58  ;;  %v645_v58 = vmul.f32 0.044715, %v2945_v57 }
 0x2f5   : > { %1801 = vmatmul.mubr.f32.gmra.mxu1 %v1117_v39  ;;  %1826 = vmatprep.subr.mxu1 %v1396_v52  ;;  %v2961_v39 = vadd.f32 %v2467_v4, %v2899_v46  ;;  %v2974_v4 = vadd.f32 %v2472_v8, %v2899_v46 }
 0x2f6   : > { %1803 = vmatprep.mubr.f32.mxu1 %v1118_v50  ;;  %1827 = vmatpush3.msra.mxu1 %v1396_v52  ;;  %v2963_v52 = vpop.permute.xlu1 %1156  ;;  %v761_v50 = vmul.f32 0.7978846, %v729_v6  ;;  %v677_v1 = vmul.f32 %v645_v58, %v2945_v57 }
 0x2f7   : > { %1828 = vmatprep.subr.mxu1 %v1395_v25 }
 0x2f8   : > { %1829 = vmatpush3.msra.mxu1 %v1395_v25  ;;  %v733_v25 = vadd.f32 %v701_v38, %v2912_v36  ;;  %2015 = vtanh.f32 %v761_v50 }
 0x2f9   : > { %1804 = vmatmul.mubr.f32.gmra.mxu1 %v1119_v40  ;;  %1830 = vmatprep.subr.mxu1 %v1394_v11  ;;  %v707_v40 = vmul.f32 %v675_v14, %v2923_v51 }
 0x2fa   : > { %1806 = vmatprep.mubr.f32.mxu1 %v1120_v10  ;;  %1831 = vmatpush3.msra.mxu1 %v1394_v11  ;;  %v679_v11 = vmul.f32 %v647_v9, %v2938_v59  ;;  %v763_v10 = vmul.f32 0.7978846, %v731_v63  ;;  %v693_v63 = vmul.f32 %v661_v22, %v3001_v37 }
 0x2fb   : > { %1832 = vmatprep.subr.mxu1 %v1393_v35 }
 0x2fc   : > { %1833 = vmatpush3.msra.mxu1 %v1393_v35  ;;  %v735_v35 = vadd.f32 %v703_v18, %v2917_v19  ;;  %2017 = vtanh.f32 %v763_v10 }
 0x2fd   : > { %1807 = vmatmul.mubr.f32.gmra.mxu1 %v1121_v34  ;;  %1834 = vmatprep.subr.mxu1 %v1392_v21  ;;  %v705_v34 = vmul.f32 %v673_v27, %v2929_v53 }
 0x2fe   : > { %1809 = vmatprep.mubr.f32.mxu1 %v1122_v29  ;;  %1835 = vmatpush3.msra.mxu1 %v1392_v21  ;;  %v649_v21 = vmul.f32 0.044715, %v2957_v61  ;;  %v651_v29 = vmul.f32 0.044715, %v2961_v39 }
 0x2ff   : > { %1836 = vmatprep.subr.mxu1 %v1391_v28 }
 0x300   : > { %1837 = vmatpush3.msra.mxu1 %v1391_v28  ;;  %v2979_v28 = vadd.f32 %v2479_v12, %v2899_v46  ;;  %v681_v8 = vmul.f32 %v649_v21, %v2957_v61  ;;  %v2990_v12 = vadd.f32 %v2484_v15, %v2899_v46  ;;  %v603_v21 = vmul.f32 0.5, %v2907_v47 }
 0x301   : > { %1810 = vmatmul.mubr.f32.gmra.mxu1 %v1123_v17  ;;  %1838 = vmatprep.subr.mxu1 %v1390_v62  ;;  %v765_v17 = vmul.f32 0.7978846, %v733_v25 }
 0x302   : > { %1812 = vmatprep.mubr.f32.mxu1 %v1124_v60  ;;  %1839 = vmatpush3.msra.mxu1 %v1390_v62  ;;  %v739_v62 = vadd.f32 %v707_v40, %v2923_v51  ;;  %v2982_v60 = vpop.permute.xlu1 %1161  ;;  %v657_v16 = vmul.f32 0.044715, %v2990_v12  ;;  %v713_v24 = vmul.f32 %v681_v8, %v2957_v61  ;;  %v725_v8 = vmul.f32 %v693_v63, %v3001_v37 }
 0x303   : > { %1840 = vmatprep.subr.mxu1 %v1389_v32  ;;  %2019 = vtanh.f32 %v765_v17  ;;  %v601_v17 = vmul.f32 0.5, %v2903_v42 }
 0x304   : > { %1841 = vmatpush3.msra.mxu1 %v1389_v32  ;;  %v767_v32 = vmul.f32 0.7978846, %v735_v35  ;;  %v771_v23 = vmul.f32 0.7978846, %v739_v62  ;;  %v689_v26 = vmul.f32 %v657_v16, %v2990_v12  ;;  %v745_v14 = vadd.f32 %v713_v24, %v2957_v61 }
 0x305   : > { %1813 = vmatmul.mubr.f32.gmra.mxu1 %v1125_v54  ;;  %1842 = vmatprep.subr.mxu1 %v1388_v45  ;;  %v737_v54 = vadd.f32 %v705_v34, %v2929_v53  ;;  %v2016_v9 = vpop.eup %2015  ;;  %v757_v22 = vadd.f32 %v725_v8, %v3001_v37 }
 0x306   : > { %1815 = vmatprep.mubr.f32.mxu1 %v1126_v41  ;;  %1843 = vmatpush3.msra.mxu1 %v1388_v45  ;;  %v711_v45 = vmul.f32 %v679_v11, %v2938_v59  ;;  %v653_v41 = vmul.f32 0.044715, %v2974_v4  ;;  %2021 = vtanh.f32 %v767_v32  ;;  %v3014_v2 = vpop.permute.xlu1 %1166  ;;  %v777_v50 = vmul.f32 0.7978846, %v745_v14 }
 0x307   : > { %1844 = vmatprep.subr.mxu1 %v1387_v48  ;;  %v769_v7 = vmul.f32 0.7978846, %v737_v54  ;;  %2023 = vtanh.f32 %v771_v23  ;;  %v721_v40 = vmul.f32 %v689_v26, %v2990_v12  ;;  %v695_v11 = vmul.f32 %v663_v43, %v3012_v30 }
 0x308   : > { %1845 = vmatpush3.msra.mxu1 %v1387_v48  ;;  %v683_v48 = vmul.f32 %v651_v29, %v2961_v39  ;;  %v743_v15 = vadd.f32 %v711_v45, %v2938_v59  ;;  %v685_v5 = vmul.f32 %v653_v41, %v2974_v4  ;;  %v825_v62 = vadd.f32 1.0, %v2016_v9 }
 0x309   : > { %1816 = vmatmul.mubr.f32.gmra.mxu1 %v1127_v0  ;;  %1846 = vmatprep.subr.mxu1 %v1386_v13  ;;  %v709_v0 = vmul.f32 %v677_v1, %v2945_v57  ;;  %2025 = vtanh.f32 %v769_v7  ;;  %v2018_v58 = vpop.eup %2017  ;;  %v753_v45 = vadd.f32 %v721_v40, %v2990_v12  ;;  %v727_v47 = vmul.f32 %v695_v11, %v3012_v30  ;;  %v1147_v7 = vpop.permute.xlu0 %1146 }
 0x30a   : > { %1847 = vmatpush3.msra.mxu1 %v1386_v13  ;;  %v655_v13 = vmul.f32 0.044715, %v2979_v28  ;;  %v715_v55 = vmul.f32 %v683_v48, %v2961_v39  ;;  %v775_v31 = vmul.f32 0.7978846, %v743_v15  ;;  %v717_v6 = vmul.f32 %v685_v5, %v2974_v4  ;;  %v3026_v18 = vpop.permute.xlu1 %1171 }
 0x30b   : > { %1848 = vmatprep.subr.mxu1 %v1385_v44  ;;  %v741_v49 = vadd.f32 %v709_v0, %v2945_v57  ;;  %v827_v29 = vadd.f32 1.0, %v2018_v58  ;;  %v605_v23 = vmul.f32 0.5, %v2912_v36  ;;  %v857_v16 = vmul.f32 %v825_v62, %v601_v17 }
 0x30c   : > { %1849 = vmatpush3.msra.mxu1 %v1385_v44  ;;  %v2997_v44 = vadd.f32 %v2493_v20, %v2899_v46  ;;  %v687_v20 = vmul.f32 %v655_v13, %v2979_v28  ;;  %v747_v46 = vadd.f32 %v715_v55, %v2961_v39  ;;  %2027 = vtanh.f32 %v775_v31 }
 0x30d   : > { %v773_v33 = vmul.f32 0.7978846, %v741_v49  ;;  %v749_v25 = vadd.f32 %v717_v6, %v2974_v4  ;;  %v859_v15 = vmul.f32 %v827_v29, %v603_v21  ;;  %v785_v55 = vmul.f32 0.7978846, %v753_v45  ;;  %v1192_v29 = vpop.permute.xlu0 %1191 }
 0x30e   : > { %v659_v56 = vmul.f32 0.044715, %v2997_v44  ;;  %v719_v27 = vmul.f32 %v687_v20, %v2979_v28  ;;  %v779_v10 = vmul.f32 0.7978846, %v747_v46  ;;  %v3037_v41 = vpop.permute.xlu1 %1176  ;;  %v759_v36 = vadd.f32 %v727_v47, %v3012_v30 }
 0x30f   : > { %2029 = vtanh.f32 %v773_v33  ;;  %v781_v54 = vmul.f32 0.7978846, %v749_v25  ;;  %v615_v47 = vmul.f32 0.5, %v2938_v59  ;;  %v619_v59 = vmul.f32 0.5, %v2961_v39 }
 0x310   : > { %v691_v38 = vmul.f32 %v659_v56, %v2997_v44  ;;  %v751_v35 = vadd.f32 %v719_v27, %v2979_v28  ;;  %v2020_v1 = vpop.eup %2019  ;;  %2031 = vtanh.f32 %v777_v50  ;;  %v789_v50 = vmul.f32 0.7978846, %v757_v22 }
 0x311   : > { %2033 = vtanh.f32 %v779_v10  ;;  %v829_v24 = vadd.f32 1.0, %v2020_v1  ;;  %v611_v1 = vmul.f32 0.5, %v2923_v51  ;;  %v613_v51 = vmul.f32 0.5, %v2945_v57 }
 0x312   : > { %v723_v34 = vmul.f32 %v691_v38, %v2997_v44  ;;  %v783_v48 = vmul.f32 0.7978846, %v751_v35  ;;  %2035 = vtanh.f32 %v781_v54  ;;  %v1182_v6 = vpop.permute.xlu1 %1181  ;;  %v791_v35 = vmul.f32 0.7978846, %v759_v36 }
 0x313   : > { %v2022_v32 = vpop.eup %2021  ;;  %v861_v46 = vmul.f32 %v829_v24, %v605_v23  ;;  %v617_v57 = vmul.f32 0.5, %v2957_v61 }
 0x314   : > { %v755_v13 = vadd.f32 %v723_v34, %v2997_v44  ;;  %v2024_v42 = vpop.eup %2023  ;;  %v831_v31 = vadd.f32 1.0, %v2022_v32  ;;  %2037 = vtanh.f32 %v783_v48 }
 0x315   : > { %2039 = vtanh.f32 %v785_v55  ;;  %v835_v11 = vadd.f32 1.0, %v2024_v42 }
 0x316   : > { %v2026_v20 = vpop.eup %2025  ;;  %v787_v33 = vmul.f32 0.7978846, %v755_v13  ;;  %v1187_v45 = vpop.permute.xlu1 %1186 }
 0x317   : > { %v833_v58 = vadd.f32 1.0, %v2026_v20  ;;  %v867_v8 = vmul.f32 %v835_v11, %v611_v1 }
 0x318   : > { %2041 = vtanh.f32 %v787_v33 }
 0x319   : > { %v2028_v9 = vpop.eup %2027  ;;  %2043 = vtanh.f32 %v789_v50 }
 0x31a   : > { %2045 = vtanh.f32 %v791_v35  ;;  %v1197_v22 = vpop.permute.xlu1 %1196 }
 0x31c   : > { %v2030_v25 = vpop.eup %2029 }
 0x31d   : > { %v837_v32 = vadd.f32 1.0, %v2030_v25  ;;  %v2032_v54 = vpop.eup %2031 }
 0x31e   : > { %v1207_v35 = vpop.permute.xlu1 %1206 }
 0x3ad   : > { %v1796_v0 = vpop.f32.mrf.mxu1 }
 0x3ae   : > { %v1296_v5 = vadd.f32 %v1796_v0, %v2940_v3  ;;  %v607_v3 = vmul.f32 0.5, %v2917_v19  ;;  %v609_v19 = vmul.f32 0.5, %v2929_v53  ;;  %v839_v0 = vadd.f32 1.0, %v2028_v9  ;;  %v2034_v53 = vpop.eup %2033 }
 0x3af   : > { %v1290_v49 = vpop.f32.mrf.mxu1  ;;  %v621_v9 = vmul.f32 0.5, %v2974_v4  ;;  %v625_v4 = vmul.f32 0.5, %v2990_v12  ;;  %v631_v12 = vmul.f32 0.5, %v3012_v30 }
 0x3b0   : > { %v1291_v56 = vadd.f32 %v1290_v49, %v1147_v7  ;;  %v1370_v38 = vmul.f32 %v1296_v5, %v859_v15  ;;  %v863_v40 = vmul.f32 %v831_v31, %v607_v3  ;;  %v865_v17 = vmul.f32 %v833_v58, %v609_v19  ;;  %v2036_v5 = vpop.eup %2035 }
 0x3b1   : > { %v1799_v26 = vpop.f32.mrf.mxu1  ;;  %v841_v15 = vadd.f32 1.0, %v2032_v54  ;;  %v843_v49 = vadd.f32 1.0, %v2034_v53  ;;  %v2038_v20 = vpop.eup %2037 }
 0x3b2   : > { %v1369_v14 = vmul.f32 %v1291_v56, %v857_v16  ;;  %v1306_v43 = vadd.f32 %v1799_v26, %v2982_v60  ;;  %v871_v16 = vmul.f32 %v839_v0, %v615_v47  ;;  %v1202_v56 = vpop.permute.xlu0 %1201  ;;  %v847_v3 = vadd.f32 1.0, %v2038_v20 }
 0x3b3   : > { %v1300_v27 = vpop.f32.mrf.mxu1  ;;  %v873_v36 = vmul.f32 %v841_v15, %v617_v57 }
 0x3b4   : > { %v1301_v63 = vadd.f32 %v1300_v27, %v2963_v52  ;;  %1850 = vmatprep.mubr.f32.mxu1 %v1369_v14  ;;  %v1372_v60 = vmul.f32 %v1306_v43, %v863_v40  ;;  %v845_v14 = vadd.f32 1.0, %v2036_v5 }
 0x3b5   : > { %v1802_v10 = vpop.f32.mrf.mxu1  ;;  %1851 = vmatmul.mubr.f32.vlgmr.msra.gmra.mxu1 %v1370_v38  ;;  %v875_v38 = vmul.f32 %v843_v49, %v619_v59 }
 0x3b6   : > { %v1371_v34 = vmul.f32 %v1301_v63, %v861_v46  ;;  %v1316_v21 = vadd.f32 %v1802_v10, %v3026_v18  ;;  %v623_v63 = vmul.f32 0.5, %v2979_v28  ;;  %v1212_v50 = vpop.permute.xlu0 %1211  ;;  %v877_v25 = vmul.f32 %v845_v14, %v621_v9 }
 0x3b7   : > { %v1310_v52 = vpop.f32.mrf.mxu1  ;;  %v627_v28 = vmul.f32 0.5, %v2997_v44 }
 0x3b8   : > { %v1311_v62 = vadd.f32 %v1310_v52, %v3014_v2  ;;  %1853 = vmatprep.mubr.f32.mxu1 %v1371_v34  ;;  %v1374_v18 = vmul.f32 %v1316_v21, %v867_v8  ;;  %v869_v2 = vmul.f32 %v837_v32, %v613_v51  ;;  %v879_v34 = vmul.f32 %v847_v3, %v623_v63  ;;  %v1217_v51 = vpop.permute.xlu1 %1216 }
 0x3b9   : > { %v1805_v48 = vpop.f32.mrf.mxu1  ;;  %1854 = vmatmul.mubr.f32.gmra.mxu1 %v1372_v60 }
 0x3ba   : > { %v1373_v13 = vmul.f32 %v1311_v62, %v865_v17  ;;  %v1326_v23 = vadd.f32 %v1805_v48, %v1182_v6  ;;  %v2040_v6 = vpop.eup %2039  ;;  %v1222_v48 = vpop.permute.xlu0 %1221 }
 0x3bb   : > { %v1320_v42 = vpop.f32.mrf.mxu1  ;;  %v2042_v46 = vpop.eup %2041  ;;  %v849_v11 = vadd.f32 1.0, %v2040_v6 }
 0x3bc   : > { %v1321_v7 = vadd.f32 %v1320_v42, %v3037_v41  ;;  %1856 = vmatprep.mubr.f32.mxu1 %v1373_v13  ;;  %v1376_v31 = vmul.f32 %v1326_v23, %v871_v16  ;;  %v2044_v10 = vpop.eup %2043  ;;  %v851_v19 = vadd.f32 1.0, %v2042_v46  ;;  %v629_v13 = vmul.f32 0.5, %v3001_v37  ;;  %v1690_v37 = vld [vmem:[%s3144_s8] ss:$0 sm:$0xff] }
 0x3bd   : > { %v1808_v24 = vpop.f32.mrf.mxu1  ;;  %1857 = vmatmul.mubr.f32.gmra.mxu1 %v1374_v18  ;;  %v2046_v1 = vpop.eup %2045  ;;  %v881_v62 = vmul.f32 %v849_v11, %v625_v4  ;;  %v853_v54 = vadd.f32 1.0, %v2044_v10 }
 0x3be   : > { %v1375_v55 = vmul.f32 %v1321_v7, %v869_v2  ;;  %v1336_v26 = vadd.f32 %v1808_v24, %v1192_v29  ;;  %v855_v8 = vadd.f32 1.0, %v2046_v1 }
 0x3bf   : > { %v1330_v33 = vpop.f32.mrf.mxu1  ;;  %v885_v23 = vmul.f32 %v853_v54, %v629_v13 }
 0x3c0   : > { %v1331_v41 = vadd.f32 %v1330_v33, %v1187_v45  ;;  %1859 = vmatprep.mubr.f32.mxu1 %v1375_v55  ;;  %v1378_v61 = vmul.f32 %v1336_v26, %v875_v38  ;;  %v883_v45 = vmul.f32 %v851_v19, %v627_v28  ;;  %v887_v2 = vmul.f32 %v855_v8, %v631_v12 }
 0x3c1   : > { %v1811_v43 = vpop.f32.mrf.mxu1  ;;  %1860 = vmatmul.mubr.f32.gmra.mxu1 %v1376_v31 }
 0x3c2   : > { %v1377_v27 = vmul.f32 %v1331_v41, %v873_v36  ;;  %v1346_v58 = vadd.f32 %v1811_v43, %v1202_v56 }
 0x3c3   : > { %v1340_v39 = vpop.f32.mrf.mxu1 }
 0x3c4   : > { %v1341_v40 = vadd.f32 %v1340_v39, %v1197_v22  ;;  %1862 = vmatprep.mubr.f32.mxu1 %v1377_v27  ;;  %v1380_v52 = vmul.f32 %v1346_v58, %v879_v34 }
 0x3c5   : > { %v1814_v60 = vpop.f32.mrf.mxu1  ;;  %1863 = vmatmul.mubr.f32.gmra.mxu1 %v1378_v61 }
 0x3c6   : > { %v1379_v21 = vmul.f32 %v1341_v40, %v877_v25  ;;  %v1356_v29 = vadd.f32 %v1814_v60, %v1212_v50 }
 0x3c7   : > { %v1350_v17 = vpop.f32.mrf.mxu1 }
 0x3c8   : > { %v1351_v32 = vadd.f32 %v1350_v17, %v1207_v35  ;;  %1865 = vmatprep.mubr.f32.mxu1 %v1379_v21  ;;  %v1382_v18 = vmul.f32 %v1356_v29, %v883_v45 }
 0x3c9   : > { %v1817_v0 = vpop.f32.mrf.mxu1  ;;  %1866 = vmatmul.mubr.f32.gmra.mxu1 %v1380_v52 }
 0x3ca   : > { %v1381_v53 = vmul.f32 %v1351_v32, %v881_v62  ;;  %v1366_v44 = vadd.f32 %v1817_v0, %v1222_v48 }
 0x3cb   : > { %v1360_v47 = vpop.f32.mrf.mxu1 }
 0x3cc   : > { %v1361_v42 = vadd.f32 %v1360_v47, %v1217_v51  ;;  %1868 = vmatprep.mubr.f32.mxu1 %v1381_v53  ;;  %v1384_v15 = vmul.f32 %v1366_v44, %v887_v2 }
 0x3cd   : > { %1869 = vmatmul.mubr.f32.gmra.mxu1 %v1382_v18 }
 0x3ce   : > { %v1383_v7 = vmul.f32 %v1361_v42, %v885_v23 }
 0x3d0   : > { %1871 = vmatprep.mubr.f32.mxu1 %v1383_v7 }
 0x3d1   : > { %1872 = vmatmul.mubr.f32.gmra.mxu1 %v1384_v15 }
 0x475   : > { %v1852_v5 = vpop.f32.mrf.mxu1 }
 0x476   : > { %v1480_v16 = vadd.f32 %v1852_v5, %v1690_v37 }
 0x477   : > { %v1474_v49 = vpop.f32.mrf.mxu1 }
 0x478   : > { %1554 = vst [vmem:[%s3068_s1 + $0x8] sm:$0xff] %v1480_v16  ;;  %v1475_v30 = vadd.f32 %v1690_v37, %v1474_v49 }
 0x479   : > { %v1855_v24 = vpop.f32.mrf.mxu1 }
 0x47a   : > { %1553 = vst [vmem:[%s3068_s1] sm:$0xff] %v1475_v30  ;;  %v1490_v20 = vadd.f32 %v1855_v24, %v1690_v37 }
 0x47b   : > { %v1484_v56 = vpop.f32.mrf.mxu1 }
 0x47c   : > { %1556 = vst [vmem:[%s3068_s1 + $0x18] sm:$0xff] %v1490_v20  ;;  %v1485_v55 = vadd.f32 %v1690_v37, %v1484_v56 }
 0x47d   : > { %v1858_v57 = vpop.f32.mrf.mxu1 }
 0x47e   : > { %1555 = vst [vmem:[%s3068_s1 + $0x10] sm:$0xff] %v1485_v55  ;;  %v1500_v22 = vadd.f32 %v1858_v57, %v1690_v37 }
 0x47f   : > { %v1494_v31 = vpop.f32.mrf.mxu1 }
 0x480   : > { %1558 = vst [vmem:[%s3068_s1 + $0x28] sm:$0xff] %v1500_v22  ;;  %v1495_v59 = vadd.f32 %v1690_v37, %v1494_v31 }
 0x481   : > { %v1861_v26 = vpop.f32.mrf.mxu1 }
 0x482   : > { %1557 = vst [vmem:[%s3068_s1 + $0x20] sm:$0xff] %v1495_v59  ;;  %v1510_v33 = vadd.f32 %v1861_v26, %v1690_v37 }
 0x483   : > { %v1504_v36 = vpop.f32.mrf.mxu1 }
 0x484   : > { %1560 = vst [vmem:[%s3068_s1 + $0x38] sm:$0xff] %v1510_v33  ;;  %v1505_v41 = vadd.f32 %v1690_v37, %v1504_v36 }
 0x485   : > { %v1864_v14 = vpop.f32.mrf.mxu1 }
 0x486   : > { %1559 = vst [vmem:[%s3068_s1 + $0x30] sm:$0xff] %v1505_v41  ;;  %v1520_v6 = vadd.f32 %v1864_v14, %v1690_v37 }
 0x487   : > { %v1514_v38 = vpop.f32.mrf.mxu1 }
 0x488   : > { %1562 = vst [vmem:[%s3068_s1 + $0x48] sm:$0xff] %v1520_v6  ;;  %v1515_v3 = vadd.f32 %v1690_v37, %v1514_v38 }
 0x489   : > { %v1867_v43 = vpop.f32.mrf.mxu1 }
 0x48a   : > { %1561 = vst [vmem:[%s3068_s1 + $0x40] sm:$0xff] %v1515_v3  ;;  %v1530_v46 = vadd.f32 %v1867_v43, %v1690_v37 }
 0x48b   : > { %v1524_v27 = vpop.f32.mrf.mxu1 }
 0x48c   : > { %1564 = vst [vmem:[%s3068_s1 + $0x58] sm:$0xff] %v1530_v46  ;;  %v1525_v9 = vadd.f32 %v1690_v37, %v1524_v27 }
 0x48d   : > { %v1870_v61 = vpop.f32.mrf.mxu1 }
 0x48e   : > { %1563 = vst [vmem:[%s3068_s1 + $0x50] sm:$0xff] %v1525_v9  ;;  %v1540_v63 = vadd.f32 %v1870_v61, %v1690_v37 }
 0x48f   : > { %v1534_v58 = vpop.f32.mrf.mxu1 }
 0x490   : > { %1566 = vst [vmem:[%s3068_s1 + $0x68] sm:$0xff] %v1540_v63  ;;  %v1535_v39 = vadd.f32 %v1690_v37, %v1534_v58 }
 0x491   : > { %v1873_v50 = vpop.f32.mrf.mxu1 }
 0x492   : > { %1565 = vst [vmem:[%s3068_s1 + $0x60] sm:$0xff] %v1535_v39  ;;  %v1550_v25 = vadd.f32 %v1873_v50, %v1690_v37 }
 0x493   : > { %v1544_v40 = vpop.f32.mrf.mxu1 }
 0x494   : > { %1568 = vst [vmem:[%s3068_s1 + $0x78] sm:$0xff] %v1550_v25  ;;  %v1545_v11 = vadd.f32 %v1690_v37, %v1544_v40 }
 0x496   : > { %1567 = vst [vmem:[%s3068_s1 + $0x70] sm:$0xff] %v1545_v11 }
 0x497   : > { %2141 = shalt.err (!%p2138_p9)
}
 0x498   : > { %s2142_s18 = scalar_lea.hbm %s3089_s15, 2048  ;;  %s2146_s22 = scalar_lea.hbm %s3145_s9, 4096 }
 0x499   : > { %p2143_p13 = scmp.ne.s32.totalorder %s3089_s15, %s2142_s18  ;;  %p2147_p4 = scmp.lt.s32.totalorder %s3089_s15, %s3145_s9 }
 0x49a   : > { %p2148_p8 = scmp.lt.s32.totalorder %s2146_s22, %s2142_s18 }
 0x49b   : > { %p2144_p5 = pnand %p2143_p13, %p3170_p10 }
 0x49c   : > { %p2149_p7 = por %p2148_p8, %p2147_p4 }
 0x49d   : > { %p2145_p0 = pneg %p2144_p5 }
 0x49f   : > { %p2150_p11 = pnand %p2149_p7, %p2145_p0 }
 0x4a1   : > { %2153 = shalt.err (!%p2150_p11)
}
 0x4a2   : > { %s2208_s27 = smov 128   ;;  %s2209_s29 = smov 8  }
 0x4a3   : > { %1884 = dma.vmem_to_hbm [thread:$0]  (%p3170_p10), %s3091_s28, 2048, %s3089_s15, %s1570_s17, %s2208_s27, %s2208_s27, %s2209_s29  }
 0x4a4 PF: > { %s1598_s13 = sand.u32 1, %s2184_s30   ;;  %p3171_p1 = scmp.ne.s32.totalorder %s3155_s16, 0 }
 0x4a5   : > { %p3172_p2 = scmp.ge.s32.totalorder %s2196_s12, 2  ;;  %s1599_s14 = scalar_lea.sflag [#allocation4], %s1598_s13 }
 0x4a7   : > { %p1898_p6 = pnand %p3172_p2, %p3171_p1 }
 0x4a9   : > { %p1899_p12 = pneg %p1898_p6 }
 0x4ab   : > { %2179 = dma.done.wait (%p1899_p12), %s1599_s14, 2048  }
 0x4ac   : > { %2181 = vsyncadd (%p1899_p12), %s1599_s14, 4294965248  ;;  %s3173_s19 = sld [smem:[#allocation12_spill]]  ;;  %p23_p3 = scmp.ge.s32.totalorder %s2335_s21, 4  }
 0x4ad   : > { %s3174_s30 = smov %s2188_s10  ;;  %s3175_s10 = smov %s2192_s11 }
 0x4ae   : > { %s3177_s12 = smov %s2335_s21  ;;  %25 = sbr.rel (!%p23_p3) target bundleno = 9 (0x9), region = 109 }
 0x4b2   : > { %s3176_s11 = smov %s3173_s19 }
 0x4b3   :  { %1604 = vsyncpa [#allocation3], 1 }
 0x4b4   :  { %1606 = vsyncpa [#allocation3 + $0x1], 1 }
 0x4b5   :  { %1607 = vsyncpa [#allocation6], 1 }
 0x4b6   :  { %1608 = vsyncpa [#allocation4], 1 }
 0x4b7   :  { %1610 = vsyncpa [#allocation4 + $0x1], 1 }

</bundles_post_ra>
